<compile_context>
chip_gen: v7x
topology: tpu7x:2x2x1
jax: 0.10.0
libtpu: 0.0.40
codegen_flags: <defaults>
</compile_context>

<pallas_src>
import functools

import numpy as np

import jax
import jax.numpy as jnp
from jax.experimental import pallas as pl
from jax.experimental.pallas import tpu as pltpu


# ----------------------------------------------------------------------------
# Fused forward kernel (single grid step, whole batch stacked along sublanes)
# ----------------------------------------------------------------------------
def _lenet_kernel(x_ref, lab_ref,
                  b1m_ref, b2m_ref,            # banded conv tap matrices (3, K, N)
                  l1_ref, r1_ref, r2_ref,      # pool row/col selection matrices
                  w1c_ref, b1_ref, w2_ref, b2_ref, w3_ref, b3_ref,
                  logits_ref, loss_ref,
                  xs_scr,
                  *, batch, num_classes):
    f32 = jnp.float32
    r1 = batch * 30 - 2          # conv1 output rows (incl. junk rows between images)
    r2 = batch * 16 - 2          # conv2 output rows

    # ---- conv1 input slab (B*30, 28): zero rows around/between images ------
    # (column zero-padding is folded into the banded tap matrices B1/B2)
    xs_scr[...] = jnp.zeros_like(xs_scr)
    for b in range(batch):
        xs_scr[b * 30 + 1:b * 30 + 29, :] = x_ref[b]
    xs = xs_scr[...]                                           # (B*30, 28)

    # ---- conv1 (1->6, 3x3, pad 1, bias=False) + relu ------------------------
    # 3 row-shifted windows x banded tap matrices (dx shift folded into weights)
    y1 = (jnp.dot(xs[0:r1, :],     b1m_ref[0], preferred_element_type=f32) +
          jnp.dot(xs[1:r1 + 1, :], b1m_ref[1], preferred_element_type=f32) +
          jnp.dot(xs[2:r1 + 2, :], b1m_ref[2], preferred_element_type=f32))
    y1 = jnp.maximum(y1, 0.0)                                  # (B*30-2, 168) [row, w*6+co]

    # ---- maxpool1 (2x2): column max once (hoisted lane shift), then row max -
    yc1 = jnp.maximum(y1[:, 0:162], y1[:, 6:168])              # (r1, 162)
    yr1 = jnp.maximum(yc1[0:r1 - 1, :], yc1[1:r1, :])          # (r1-1, 162)

    # ---- pooled row/col select + conv2 zero row-pad: xs2 = L1 @ yr1 @ R1 ----
    xs2 = jnp.dot(l1_ref[...],
                  jnp.dot(yr1, r1_ref[...], preferred_element_type=f32),
                  preferred_element_type=f32)                  # (B*16, 84) [row, w*6+ci]

    # ---- conv2 (6->16, 3x3, pad 1, bias=False) + relu ------------------------
    y2 = (jnp.dot(xs2[0:r2, :],     b2m_ref[0], preferred_element_type=f32) +
          jnp.dot(xs2[1:r2 + 1, :], b2m_ref[1], preferred_element_type=f32) +
          jnp.dot(xs2[2:r2 + 2, :], b2m_ref[2], preferred_element_type=f32))
    y2 = jnp.maximum(y2, 0.0)                                  # (B*16-2, 224) [row, w*16+co]

    # ---- maxpool2 ------------------------------------------------------------
    yc2 = jnp.maximum(y2[:, 0:208], y2[:, 16:224])             # (r2, 208)
    yr2 = jnp.maximum(yc2[0:r2 - 1, :], yc2[1:r2, :])          # (r2-1, 208)

    # ---- fc1: pool column select, then ONE batched K=112 matmul against the
    #      h-concatenated (layout-permuted) fc1 weights; diagonal gather + sum -
    p2c = jnp.dot(yr2, r2_ref[...], preferred_element_type=f32)     # (r2-1, 112)
    g = jnp.dot(p2c, w1c_ref[...], preferred_element_type=f32)      # (r2-1, 7*120)
    # h1[b, o] = b1[o] + sum_h g[b*16 + 2h, 120*h + o]
    accs = [None] * batch
    for h in range(7):
        gh = g[:, 120 * h:120 * (h + 1)]                            # hoisted lane slice
        for b in range(batch):
            part = gh[b * 16 + 2 * h:b * 16 + 2 * h + 1, :]         # (1, 120)
            accs[b] = part if accs[b] is None else accs[b] + part
    h1 = jnp.concatenate(accs, axis=0) + b1_ref[...]                # (B, 120)
    h1 = jnp.maximum(h1, 0.0)

    # ---- fc2 + relu, fc3 (whole batch as M) ----------------------------------
    h2 = jnp.maximum(
        jnp.dot(h1, w2_ref[...], preferred_element_type=f32) + b2_ref[...], 0.0)
    z = jnp.dot(h2, w3_ref[...], preferred_element_type=f32) + b3_ref[...]
    logits_ref[...] = z                                             # (B, C)

    # ---- mean cross-entropy (labels read from SMEM, scalar path) -------------
    cls = jax.lax.broadcasted_iota(jnp.int32, (1, num_classes), 1)
    total = jnp.zeros((1, 1), f32)
    for b in range(batch):
        zb = z[b:b + 1, :]
        zmax = jnp.max(zb, axis=-1, keepdims=True)
        lse = zmax + jnp.log(jnp.sum(jnp.exp(zb - zmax), axis=-1, keepdims=True))
        onehot = (cls == lab_ref[b]).astype(f32)
        picked = jnp.sum(zb * onehot, axis=-1, keepdims=True)
        total = total + (lse - picked)
    loss_ref[...] = total * (1.0 / batch)


# ----------------------------------------------------------------------------
# One-time host-side parameter repack (zero per-step runtime cost)
# ----------------------------------------------------------------------------
def prepare_params(params, batch):
    conv1_w, conv2_w, fc1_w, fc1_b, fc2_w, fc2_b, fc3_w, fc3_b = [
        np.asarray(p, np.float32) for p in params]

    # conv1 banded tap matrices, one per row-shift dy; dx shift folded in:
    #   B1[dy, s, j*6 + co] = w1[co, 0, dy, s - j + 1]  (valid dx in [0,2])
    B1 = np.zeros((3, 28, 28 * 6), np.float32)
    for dy in range(3):
        for dx in range(3):
            for j in range(28):
                s = j - 1 + dx
                if 0 <= s < 28:
                    B1[dy, s, j * 6:(j + 1) * 6] = conv1_w[:, 0, dy, dx]

    # conv2: same, with 6 input channels packed along lanes:
    #   B2[dy, s*6 + ci, j*16 + co] = w2[co, ci, dy, s - j + 1]
    B2 = np.zeros((3, 14 * 6, 14 * 16), np.float32)
    for dy in range(3):
        for dx in range(3):
            for j in range(14):
                s = j - 1 + dx
                if 0 <= s < 14:
                    for ci in range(6):
                        B2[dy, s * 6 + ci, j * 16:(j + 1) * 16] = conv2_w[:, ci, dy, dx]

    # pool1 row select (+ conv2 zero row padding), block-diagonal over batch
    L1 = np.zeros((batch * 16, batch * 30 - 3), np.float32)
    for b in range(batch):
        for ph in range(14):
            L1[b * 16 + 1 + ph, b * 30 + 2 * ph] = 1.0

    # pool1 column select (even w of the column-maxed conv1 output)
    R1 = np.zeros((27 * 6, 14 * 6), np.float32)
    for pw in range(14):
        for c in range(6):
            R1[2 * pw * 6 + c, pw * 6 + c] = 1.0

    # pool2 column select
    R2 = np.zeros((13 * 16, 7 * 16), np.float32)
    for pw in range(7):
        for c in range(16):
            R2[2 * pw * 16 + c, pw * 16 + c] = 1.0

    # fc1 weights, h-blocks concatenated along lanes, consuming the kernel's
    # pooled (w*16 + c) lane layout directly (no NCHW flatten at runtime):
    #   W1cat[w*16 + c, h*120 + o] = fc1_w[o, c*49 + h*7 + w]
    W1cat = np.zeros((7 * 16, 7 * 120), np.float32)
    for h in range(7):
        for w in range(7):
            for c in range(16):
                W1cat[w * 16 + c, h * 120:(h + 1) * 120] = fc1_w[:, c * 49 + h * 7 + w]

    return dict(
        B1=jnp.asarray(B1), B2=jnp.asarray(B2),
        L1=jnp.asarray(L1), R1=jnp.asarray(R1), R2=jnp.asarray(R2),
        W1cat=jnp.asarray(W1cat),
        b1=jnp.asarray(fc1_b.reshape(1, -1)),
        W2=jnp.asarray(np.ascontiguousarray(fc2_w.T)),
        b2=jnp.asarray(fc2_b.reshape(1, -1)),
        W3=jnp.asarray(np.ascontiguousarray(fc3_w.T)),
        b3=jnp.asarray(fc3_b.reshape(1, -1)),
    )


# ----------------------------------------------------------------------------
# Forward: (loss, logits), matching LeNet.forward(inputs, labels)
# ----------------------------------------------------------------------------
def lenet_forward(x_nchw, prepped, labels):
    n = x_nchw.shape[0]
    num_classes = prepped['W3'].shape[1]

    x3d = x_nchw.reshape(n, 28, 28).astype(jnp.float32)
    lab = labels.astype(jnp.int32).reshape(n)

    order = ('B1', 'B2', 'L1', 'R1', 'R2', 'W1cat', 'b1', 'W2', 'b2', 'W3', 'b3')
    consts = [prepped[k] for k in order]

    def vspec(a):
        zeros = (0,) * a.ndim
        return pl.BlockSpec(a.shape, lambda i, zeros=zeros: zeros)

    in_specs = ([vspec(x3d),
                 pl.BlockSpec(memory_space=pltpu.MemorySpace.SMEM)]  # labels -> SMEM
                + [vspec(a) for a in consts])

    logits, loss = pl.pallas_call(
        functools.partial(_lenet_kernel, batch=n, num_classes=num_classes),
        out_shape=(jax.ShapeDtypeStruct((n, num_classes), jnp.float32),
                   jax.ShapeDtypeStruct((1, 1), jnp.float32)),
        grid=(1,),
        in_specs=in_specs,
        out_specs=(pl.BlockSpec((n, num_classes), lambda i: (0, 0)),
                   pl.BlockSpec((1, 1), lambda i: (0, 0))),
        scratch_shapes=[pltpu.VMEM((n * 30, 28), jnp.float32)],
        compiler_params=pltpu.CompilerParams(
            dimension_semantics=("arbitrary",),
            vmem_limit_bytes=32 * 1024 * 1024),
    )(x3d, lab, *consts)
    return loss[0, 0], logits


# ----------------------------------------------------------------------------
# Pure-numpy reference (f64) for a sanity check
# ----------------------------------------------------------------------------
def _reference_forward(x, labels, params):
    conv1_w, conv2_w, fc1_w, fc1_b, fc2_w, fc2_b, fc3_w, fc3_b = [
        np.asarray(p, np.float64) for p in params]
    x = np.asarray(x, np.float64)
    labels = np.asarray(labels)

    def conv3x3(inp, w):  # pad 1, stride 1, no bias
        N, Ci, H, W = inp.shape
        Co = w.shape[0]
        p = np.zeros((N, Ci, H + 2, W + 2), inp.dtype)
        p[:, :, 1:H + 1, 1:W + 1] = inp
        out = np.zeros((N, Co, H, W), inp.dtype)
        for dy in range(3):
            for dx in range(3):
                out += np.einsum('ncij,oc->noij',
                                 p[:, :, dy:dy + H, dx:dx + W], w[:, :, dy, dx])
        return out

    def pool2(inp):
        N, C, H, W = inp.shape
        return inp.reshape(N, C, H // 2, 2, W // 2, 2).max(axis=(3, 5))

    y = pool2(np.maximum(conv3x3(x, conv1_w), 0.0))
    y = pool2(np.maximum(conv3x3(y, conv2_w), 0.0))
    y = y.reshape(y.shape[0], -1)
    h1 = np.maximum(y @ fc1_w.T + fc1_b, 0.0)
    h2 = np.maximum(h1 @ fc2_w.T + fc2_b, 0.0)
    z = h2 @ fc3_w.T + fc3_b
    zmax = z.max(axis=-1, keepdims=True)
    lse = zmax[:, 0] + np.log(np.exp(z - zmax).sum(axis=-1))
    picked = z[np.arange(z.shape[0]), labels]
    return float(np.mean(lse - picked)), z


if __name__ == "__main__":
    # fc1 = Linear(16*7*7, 120) pins the spatial size to 28x28 (MNIST), so the
    # input must be (batch, 1, 28, 28); batch kept small (2).
    num_classes = 10
    batch = 2

    key = jax.random.PRNGKey(0)
    ks = jax.random.split(key, 10)
    conv1_w = 0.20 * jax.random.normal(ks[0], (6, 1, 3, 3), jnp.float32)
    conv2_w = 0.10 * jax.random.normal(ks[1], (16, 6, 3, 3), jnp.float32)
    fc1_w = 0.05 * jax.random.normal(ks[2], (120, 16 * 7 * 7), jnp.float32)
    fc1_b = 0.05 * jax.random.normal(ks[3], (120,), jnp.float32)
    fc2_w = 0.05 * jax.random.normal(ks[4], (84, 120), jnp.float32)
    fc2_b = 0.05 * jax.random.normal(ks[5], (84,), jnp.float32)
    fc3_w = 0.05 * jax.random.normal(ks[6], (num_classes, 84), jnp.float32)
    fc3_b = 0.05 * jax.random.normal(ks[7], (num_classes,), jnp.float32)
    params = (conv1_w, conv2_w, fc1_w, fc1_b, fc2_w, fc2_b, fc3_w, fc3_b)

    x = jax.random.normal(ks[8], (batch, 1, 28, 28), jnp.float32)
    labels = jax.random.randint(ks[9], (batch,), 0, num_classes)

    prepped = prepare_params(params, batch)            # one-time host repack
    loss, logits = jax.jit(lenet_forward)(x, prepped, labels)
    jax.block_until_ready((loss, logits))

    assert logits.shape == (batch, num_classes)
    assert loss.shape == ()

    ref_loss, ref_logits = _reference_forward(x, labels, params)
    np.testing.assert_allclose(np.asarray(logits), ref_logits, rtol=1e-2, atol=1e-2)
    np.testing.assert_allclose(float(loss), ref_loss, rtol=1e-2, atol=1e-2)

    print("KERNEL_OK")
</pallas_src>

<mosaic_0001>
module attributes {stable_mosaic.version = 11 : i64} {
  func.func @_lenet_kernel(%arg0: i32, %arg1: memref<2x28x28xf32, #tpu.memory_space<vmem>>, %arg2: memref<2xi32, #tpu.memory_space<smem>>, %arg3: memref<3x28x168xf32, #tpu.memory_space<vmem>>, %arg4: memref<3x84x224xf32, #tpu.memory_space<vmem>>, %arg5: memref<32x57xf32, #tpu.memory_space<vmem>>, %arg6: memref<162x84xf32, #tpu.memory_space<vmem>>, %arg7: memref<208x112xf32, #tpu.memory_space<vmem>>, %arg8: memref<112x840xf32, #tpu.memory_space<vmem>>, %arg9: memref<1x120xf32, #tpu.memory_space<vmem>>, %arg10: memref<120x84xf32, #tpu.memory_space<vmem>>, %arg11: memref<1x84xf32, #tpu.memory_space<vmem>>, %arg12: memref<84x10xf32, #tpu.memory_space<vmem>>, %arg13: memref<1x10xf32, #tpu.memory_space<vmem>>, %arg14: memref<2x10xf32, #tpu.memory_space<vmem>>, %arg15: memref<1x1xf32, #tpu.memory_space<vmem>>, %arg16: memref<60x28xf32, #tpu.memory_space<vmem>>) attributes {dimension_semantics = [#tpu.dimension_semantics<arbitrary>], iteration_bounds = array<i64: 1>, scalar_prefetch = 0 : i64, scratch_operands = 1 : i64, tpu.core_type = #tpu.core_type<tc>, window_params = [{pipeline_mode = #tpu.pipeline_mode<synchronous>, transform_indices = @transform_0, window_bounds = array<i64: 2, 28, 28>}, {transform_indices = @transform_1, window_bounds = array<i64: 2>}, {pipeline_mode = #tpu.pipeline_mode<synchronous>, transform_indices = @transform_2, window_bounds = array<i64: 3, 28, 168>}, {pipeline_mode = #tpu.pipeline_mode<synchronous>, transform_indices = @transform_3, window_bounds = array<i64: 3, 84, 224>}, {pipeline_mode = #tpu.pipeline_mode<synchronous>, transform_indices = @transform_4, window_bounds = array<i64: 32, 57>}, {pipeline_mode = #tpu.pipeline_mode<synchronous>, transform_indices = @transform_5, window_bounds = array<i64: 162, 84>}, {pipeline_mode = #tpu.pipeline_mode<synchronous>, transform_indices = @transform_6, window_bounds = array<i64: 208, 112>}, {pipeline_mode = #tpu.pipeline_mode<synchronous>, transform_indices = @transform_7, window_bounds = array<i64: 112, 840>}, {pipeline_mode = #tpu.pipeline_mode<synchronous>, transform_indices = @transform_8, window_bounds = array<i64: 1, 120>}, {pipeline_mode = #tpu.pipeline_mode<synchronous>, transform_indices = @transform_9, window_bounds = array<i64: 120, 84>}, {pipeline_mode = #tpu.pipeline_mode<synchronous>, transform_indices = @transform_10, window_bounds = array<i64: 1, 84>}, {pipeline_mode = #tpu.pipeline_mode<synchronous>, transform_indices = @transform_11, window_bounds = array<i64: 84, 10>}, {pipeline_mode = #tpu.pipeline_mode<synchronous>, transform_indices = @transform_12, window_bounds = array<i64: 1, 10>}, {pipeline_mode = #tpu.pipeline_mode<synchronous>, transform_indices = @transform_13, window_bounds = array<i64: 2, 10>}, {pipeline_mode = #tpu.pipeline_mode<synchronous>, transform_indices = @transform_14, window_bounds = array<i64: 1, 1>}]} {
    %cst = arith.constant 0.000000e+00 : f32
    %0 = vector.broadcast %cst : f32 to vector<60x28xf32>
    %c0 = arith.constant 0 : index
    %c0_0 = arith.constant 0 : index
    %1 = vector.load %arg16[%c0, %c0_0] : memref<60x28xf32, #tpu.memory_space<vmem>>, vector<60x28xf32>
    tpu.vector_store %arg16[%c0, %c0_0], %0 {strides = array<i32>} : memref<60x28xf32, #tpu.memory_space<vmem>>, vector<60x28xf32>,
    %c0_1 = arith.constant 0 : index
    %c0_2 = arith.constant 0 : index
    %c0_3 = arith.constant 0 : index
    %2 = vector.load %arg1[%c0_1, %c0_2, %c0_3] : memref<2x28x28xf32, #tpu.memory_space<vmem>>, vector<1x28x28xf32>
    %3 = vector.shape_cast %2 : vector<1x28x28xf32> to vector<28x28xf32>
    %c1 = arith.constant 1 : index
    %c0_4 = arith.constant 0 : index
    %4 = vector.load %arg16[%c1, %c0_4] : memref<60x28xf32, #tpu.memory_space<vmem>>, vector<28x28xf32>
    tpu.vector_store %arg16[%c1, %c0_4], %3 {strides = array<i32>} : memref<60x28xf32, #tpu.memory_space<vmem>>, vector<28x28xf32>,
    %c1_5 = arith.constant 1 : index
    %c0_6 = arith.constant 0 : index
    %c0_7 = arith.constant 0 : index
    %5 = vector.load %arg1[%c1_5, %c0_6, %c0_7] : memref<2x28x28xf32, #tpu.memory_space<vmem>>, vector<1x28x28xf32>
    %6 = vector.shape_cast %5 : vector<1x28x28xf32> to vector<28x28xf32>
    %c31 = arith.constant 31 : index
    %c0_8 = arith.constant 0 : index
    %7 = vector.load %arg16[%c31, %c0_8] : memref<60x28xf32, #tpu.memory_space<vmem>>, vector<28x28xf32>
    tpu.vector_store %arg16[%c31, %c0_8], %6 {strides = array<i32>} : memref<60x28xf32, #tpu.memory_space<vmem>>, vector<28x28xf32>,
    %c0_9 = arith.constant 0 : index
    %c0_10 = arith.constant 0 : index
    %8 = vector.load %arg16[%c0_9, %c0_10] : memref<60x28xf32, #tpu.memory_space<vmem>>, vector<60x28xf32>
    %9 = vector.extract_strided_slice %8 {offsets = [0, 0], sizes = [58, 28], strides = [1, 1]} : vector<60x28xf32> to vector<58x28xf32>
    %c0_11 = arith.constant 0 : index
    %c0_12 = arith.constant 0 : index
    %c0_13 = arith.constant 0 : index
    %10 = vector.load %arg3[%c0_11, %c0_12, %c0_13] : memref<3x28x168xf32, #tpu.memory_space<vmem>>, vector<1x28x168xf32>
    %11 = vector.shape_cast %10 : vector<1x28x168xf32> to vector<28x168xf32>
    %cst_14 = arith.constant dense<0.000000e+00> : vector<58x168xf32>
    %12 = tpu.matmul %9, %11, %cst_14 {dimension_numbers = #tpu.dot_dimension_numbers<[1], [0], [0], [1], [0, 0, 1, 1], [], []>} : vector<58x28xf32>, vector<28x168xf32>, vector<58x168xf32> -> vector<58x168xf32>
    %13 = vector.extract_strided_slice %8 {offsets = [1, 0], sizes = [58, 28], strides = [1, 1]} : vector<60x28xf32> to vector<58x28xf32>
    %c1_15 = arith.constant 1 : index
    %c0_16 = arith.constant 0 : index
    %c0_17 = arith.constant 0 : index
    %14 = vector.load %arg3[%c1_15, %c0_16, %c0_17] : memref<3x28x168xf32, #tpu.memory_space<vmem>>, vector<1x28x168xf32>
    %15 = vector.shape_cast %14 : vector<1x28x168xf32> to vector<28x168xf32>
    %cst_18 = arith.constant dense<0.000000e+00> : vector<58x168xf32>
    %16 = tpu.matmul %13, %15, %cst_18 {dimension_numbers = #tpu.dot_dimension_numbers<[1], [0], [0], [1], [0, 0, 1, 1], [], []>} : vector<58x28xf32>, vector<28x168xf32>, vector<58x168xf32> -> vector<58x168xf32>
    %17 = arith.addf %12, %16 : vector<58x168xf32>
    %18 = vector.extract_strided_slice %8 {offsets = [2, 0], sizes = [58, 28], strides = [1, 1]} : vector<60x28xf32> to vector<58x28xf32>
    %c2 = arith.constant 2 : index
    %c0_19 = arith.constant 0 : index
    %c0_20 = arith.constant 0 : index
    %19 = vector.load %arg3[%c2, %c0_19, %c0_20] : memref<3x28x168xf32, #tpu.memory_space<vmem>>, vector<1x28x168xf32>
    %20 = vector.shape_cast %19 : vector<1x28x168xf32> to vector<28x168xf32>
    %cst_21 = arith.constant dense<0.000000e+00> : vector<58x168xf32>
    %21 = tpu.matmul %18, %20, %cst_21 {dimension_numbers = #tpu.dot_dimension_numbers<[1], [0], [0], [1], [0, 0, 1, 1], [], []>} : vector<58x28xf32>, vector<28x168xf32>, vector<58x168xf32> -> vector<58x168xf32>
    %22 = arith.addf %17, %21 : vector<58x168xf32>
    %cst_22 = arith.constant 0.000000e+00 : f32
    %23 = vector.broadcast %cst_22 : f32 to vector<58x168xf32>
    %24 = arith.maximumf %22, %23 : vector<58x168xf32>
    %25 = vector.extract_strided_slice %24 {offsets = [0, 0], sizes = [58, 162], strides = [1, 1]} : vector<58x168xf32> to vector<58x162xf32>
    %26 = vector.extract_strided_slice %24 {offsets = [0, 6], sizes = [58, 162], strides = [1, 1]} : vector<58x168xf32> to vector<58x162xf32>
    %27 = arith.maximumf %25, %26 : vector<58x162xf32>
    %28 = vector.extract_strided_slice %27 {offsets = [0, 0], sizes = [57, 162], strides = [1, 1]} : vector<58x162xf32> to vector<57x162xf32>
    %29 = vector.extract_strided_slice %27 {offsets = [1, 0], sizes = [57, 162], strides = [1, 1]} : vector<58x162xf32> to vector<57x162xf32>
    %30 = arith.maximumf %28, %29 : vector<57x162xf32>
    %c0_23 = arith.constant 0 : index
    %c0_24 = arith.constant 0 : index
    %31 = vector.load %arg5[%c0_23, %c0_24] : memref<32x57xf32, #tpu.memory_space<vmem>>, vector<32x57xf32>
    %c0_25 = arith.constant 0 : index
    %c0_26 = arith.constant 0 : index
    %32 = vector.load %arg6[%c0_25, %c0_26] : memref<162x84xf32, #tpu.memory_space<vmem>>, vector<162x84xf32>
    %cst_27 = arith.constant dense<0.000000e+00> : vector<57x84xf32>
    %33 = tpu.matmul %30, %32, %cst_27 {dimension_numbers = #tpu.dot_dimension_numbers<[1], [0], [0], [1], [0, 0, 1, 1], [], []>} : vector<57x162xf32>, vector<162x84xf32>, vector<57x84xf32> -> vector<57x84xf32>
    %cst_28 = arith.constant dense<0.000000e+00> : vector<32x84xf32>
    %34 = tpu.matmul %31, %33, %cst_28 {dimension_numbers = #tpu.dot_dimension_numbers<[1], [0], [0], [1], [0, 0, 1, 1], [], []>} : vector<32x57xf32>, vector<57x84xf32>, vector<32x84xf32> -> vector<32x84xf32>
    %35 = vector.extract_strided_slice %34 {offsets = [0, 0], sizes = [30, 84], strides = [1, 1]} : vector<32x84xf32> to vector<30x84xf32>
    %c0_29 = arith.constant 0 : index
    %c0_30 = arith.constant 0 : index
    %c0_31 = arith.constant 0 : index
    %36 = vector.load %arg4[%c0_29, %c0_30, %c0_31] : memref<3x84x224xf32, #tpu.memory_space<vmem>>, vector<1x84x224xf32>
    %37 = vector.shape_cast %36 : vector<1x84x224xf32> to vector<84x224xf32>
    %cst_32 = arith.constant dense<0.000000e+00> : vector<30x224xf32>
    %38 = tpu.matmul %35, %37, %cst_32 {dimension_numbers = #tpu.dot_dimension_numbers<[1], [0], [0], [1], [0, 0, 1, 1], [], []>} : vector<30x84xf32>, vector<84x224xf32>, vector<30x224xf32> -> vector<30x224xf32>
    %39 = vector.extract_strided_slice %34 {offsets = [1, 0], sizes = [30, 84], strides = [1, 1]} : vector<32x84xf32> to vector<30x84xf32>
    %c1_33 = arith.constant 1 : index
    %c0_34 = arith.constant 0 : index
    %c0_35 = arith.constant 0 : index
    %40 = vector.load %arg4[%c1_33, %c0_34, %c0_35] : memref<3x84x224xf32, #tpu.memory_space<vmem>>, vector<1x84x224xf32>
    %41 = vector.shape_cast %40 : vector<1x84x224xf32> to vector<84x224xf32>
    %cst_36 = arith.constant dense<0.000000e+00> : vector<30x224xf32>
    %42 = tpu.matmul %39, %41, %cst_36 {dimension_numbers = #tpu.dot_dimension_numbers<[1], [0], [0], [1], [0, 0, 1, 1], [], []>} : vector<30x84xf32>, vector<84x224xf32>, vector<30x224xf32> -> vector<30x224xf32>
    %43 = arith.addf %38, %42 : vector<30x224xf32>
    %44 = vector.extract_strided_slice %34 {offsets = [2, 0], sizes = [30, 84], strides = [1, 1]} : vector<32x84xf32> to vector<30x84xf32>
    %c2_37 = arith.constant 2 : index
    %c0_38 = arith.constant 0 : index
    %c0_39 = arith.constant 0 : index
    %45 = vector.load %arg4[%c2_37, %c0_38, %c0_39] : memref<3x84x224xf32, #tpu.memory_space<vmem>>, vector<1x84x224xf32>
    %46 = vector.shape_cast %45 : vector<1x84x224xf32> to vector<84x224xf32>
    %cst_40 = arith.constant dense<0.000000e+00> : vector<30x224xf32>
    %47 = tpu.matmul %44, %46, %cst_40 {dimension_numbers = #tpu.dot_dimension_numbers<[1], [0], [0], [1], [0, 0, 1, 1], [], []>} : vector<30x84xf32>, vector<84x224xf32>, vector<30x224xf32> -> vector<30x224xf32>
    %48 = arith.addf %43, %47 : vector<30x224xf32>
    %cst_41 = arith.constant 0.000000e+00 : f32
    %49 = vector.broadcast %cst_41 : f32 to vector<30x224xf32>
    %50 = arith.maximumf %48, %49 : vector<30x224xf32>
    %51 = vector.extract_strided_slice %50 {offsets = [0, 0], sizes = [30, 208], strides = [1, 1]} : vector<30x224xf32> to vector<30x208xf32>
    %52 = vector.extract_strided_slice %50 {offsets = [0, 16], sizes = [30, 208], strides = [1, 1]} : vector<30x224xf32> to vector<30x208xf32>
    %53 = arith.maximumf %51, %52 : vector<30x208xf32>
    %54 = vector.extract_strided_slice %53 {offsets = [0, 0], sizes = [29, 208], strides = [1, 1]} : vector<30x208xf32> to vector<29x208xf32>
    %55 = vector.extract_strided_slice %53 {offsets = [1, 0], sizes = [29, 208], strides = [1, 1]} : vector<30x208xf32> to vector<29x208xf32>
    %56 = arith.maximumf %54, %55 : vector<29x208xf32>
    %c0_42 = arith.constant 0 : index
    %c0_43 = arith.constant 0 : index
    %57 = vector.load %arg7[%c0_42, %c0_43] : memref<208x112xf32, #tpu.memory_space<vmem>>, vector<208x112xf32>
    %cst_44 = arith.constant dense<0.000000e+00> : vector<29x112xf32>
    %58 = tpu.matmul %56, %57, %cst_44 {dimension_numbers = #tpu.dot_dimension_numbers<[1], [0], [0], [1], [0, 0, 1, 1], [], []>} : vector<29x208xf32>, vector<208x112xf32>, vector<29x112xf32> -> vector<29x112xf32>
    %c0_45 = arith.constant 0 : index
    %c0_46 = arith.constant 0 : index
    %59 = vector.load %arg8[%c0_45, %c0_46] : memref<112x840xf32, #tpu.memory_space<vmem>>, vector<112x840xf32>
    %cst_47 = arith.constant dense<0.000000e+00> : vector<29x840xf32>
    %60 = tpu.matmul %58, %59, %cst_47 {dimension_numbers = #tpu.dot_dimension_numbers<[1], [0], [0], [1], [0, 0, 1, 1], [], []>} : vector<29x112xf32>, vector<112x840xf32>, vector<29x840xf32> -> vector<29x840xf32>
    %61 = vector.extract_strided_slice %60 {offsets = [0, 0], sizes = [29, 120], strides = [1, 1]} : vector<29x840xf32> to vector<29x120xf32>
    %62 = vector.extract_strided_slice %61 {offsets = [0, 0], sizes = [1, 120], strides = [1, 1]} : vector<29x120xf32> to vector<1x120xf32>
    %63 = vector.extract_strided_slice %61 {offsets = [16, 0], sizes = [1, 120], strides = [1, 1]} : vector<29x120xf32> to vector<1x120xf32>
    %64 = vector.extract_strided_slice %60 {offsets = [0, 120], sizes = [29, 120], strides = [1, 1]} : vector<29x840xf32> to vector<29x120xf32>
    %65 = vector.extract_strided_slice %64 {offsets = [2, 0], sizes = [1, 120], strides = [1, 1]} : vector<29x120xf32> to vector<1x120xf32>
    %66 = arith.addf %62, %65 : vector<1x120xf32>
    %67 = vector.extract_strided_slice %64 {offsets = [18, 0], sizes = [1, 120], strides = [1, 1]} : vector<29x120xf32> to vector<1x120xf32>
    %68 = arith.addf %63, %67 : vector<1x120xf32>
    %69 = vector.extract_strided_slice %60 {offsets = [0, 240], sizes = [29, 120], strides = [1, 1]} : vector<29x840xf32> to vector<29x120xf32>
    %70 = vector.extract_strided_slice %69 {offsets = [4, 0], sizes = [1, 120], strides = [1, 1]} : vector<29x120xf32> to vector<1x120xf32>
    %71 = arith.addf %66, %70 : vector<1x120xf32>
    %72 = vector.extract_strided_slice %69 {offsets = [20, 0], sizes = [1, 120], strides = [1, 1]} : vector<29x120xf32> to vector<1x120xf32>
    %73 = arith.addf %68, %72 : vector<1x120xf32>
    %74 = vector.extract_strided_slice %60 {offsets = [0, 360], sizes = [29, 120], strides = [1, 1]} : vector<29x840xf32> to vector<29x120xf32>
    %75 = vector.extract_strided_slice %74 {offsets = [6, 0], sizes = [1, 120], strides = [1, 1]} : vector<29x120xf32> to vector<1x120xf32>
    %76 = arith.addf %71, %75 : vector<1x120xf32>
    %77 = vector.extract_strided_slice %74 {offsets = [22, 0], sizes = [1, 120], strides = [1, 1]} : vector<29x120xf32> to vector<1x120xf32>
    %78 = arith.addf %73, %77 : vector<1x120xf32>
    %79 = vector.extract_strided_slice %60 {offsets = [0, 480], sizes = [29, 120], strides = [1, 1]} : vector<29x840xf32> to vector<29x120xf32>
    %80 = vector.extract_strided_slice %79 {offsets = [8, 0], sizes = [1, 120], strides = [1, 1]} : vector<29x120xf32> to vector<1x120xf32>
    %81 = arith.addf %76, %80 : vector<1x120xf32>
    %82 = vector.extract_strided_slice %79 {offsets = [24, 0], sizes = [1, 120], strides = [1, 1]} : vector<29x120xf32> to vector<1x120xf32>
    %83 = arith.addf %78, %82 : vector<1x120xf32>
    %84 = vector.extract_strided_slice %60 {offsets = [0, 600], sizes = [29, 120], strides = [1, 1]} : vector<29x840xf32> to vector<29x120xf32>
    %85 = vector.extract_strided_slice %84 {offsets = [10, 0], sizes = [1, 120], strides = [1, 1]} : vector<29x120xf32> to vector<1x120xf32>
    %86 = arith.addf %81, %85 : vector<1x120xf32>
    %87 = vector.extract_strided_slice %84 {offsets = [26, 0], sizes = [1, 120], strides = [1, 1]} : vector<29x120xf32> to vector<1x120xf32>
    %88 = arith.addf %83, %87 : vector<1x120xf32>
    %89 = vector.extract_strided_slice %60 {offsets = [0, 720], sizes = [29, 120], strides = [1, 1]} : vector<29x840xf32> to vector<29x120xf32>
    %90 = vector.extract_strided_slice %89 {offsets = [12, 0], sizes = [1, 120], strides = [1, 1]} : vector<29x120xf32> to vector<1x120xf32>
    %91 = arith.addf %86, %90 : vector<1x120xf32>
    %92 = vector.extract_strided_slice %89 {offsets = [28, 0], sizes = [1, 120], strides = [1, 1]} : vector<29x120xf32> to vector<1x120xf32>
    %93 = arith.addf %88, %92 : vector<1x120xf32>
    %94 = tpu.concatenate %91, %93 in 0 : vector<1x120xf32>, vector<1x120xf32> -> vector<2x120xf32>
    %c0_48 = arith.constant 0 : index
    %c0_49 = arith.constant 0 : index
    %95 = vector.load %arg9[%c0_48, %c0_49] : memref<1x120xf32, #tpu.memory_space<vmem>>, vector<1x120xf32>
    %96 = vector.broadcast %95 : vector<1x120xf32> to vector<2x120xf32>
    %97 = arith.addf %94, %96 : vector<2x120xf32>
    %cst_50 = arith.constant 0.000000e+00 : f32
    %98 = vector.broadcast %cst_50 : f32 to vector<2x120xf32>
    %99 = arith.maximumf %97, %98 : vector<2x120xf32>
    %c0_51 = arith.constant 0 : index
    %c0_52 = arith.constant 0 : index
    %100 = vector.load %arg10[%c0_51, %c0_52] : memref<120x84xf32, #tpu.memory_space<vmem>>, vector<120x84xf32>
    %cst_53 = arith.constant dense<0.000000e+00> : vector<2x84xf32>
    %101 = tpu.matmul %99, %100, %cst_53 {dimension_numbers = #tpu.dot_dimension_numbers<[1], [0], [0], [1], [0, 0, 1, 1], [], []>} : vector<2x120xf32>, vector<120x84xf32>, vector<2x84xf32> -> vector<2x84xf32>
    %c0_54 = arith.constant 0 : index
    %c0_55 = arith.constant 0 : index
    %102 = vector.load %arg11[%c0_54, %c0_55] : memref<1x84xf32, #tpu.memory_space<vmem>>, vector<1x84xf32>
    %103 = vector.broadcast %102 : vector<1x84xf32> to vector<2x84xf32>
    %104 = arith.addf %101, %103 : vector<2x84xf32>
    %cst_56 = arith.constant 0.000000e+00 : f32
    %105 = vector.broadcast %cst_56 : f32 to vector<2x84xf32>
    %106 = arith.maximumf %104, %105 : vector<2x84xf32>
    %c0_57 = arith.constant 0 : index
    %c0_58 = arith.constant 0 : index
    %107 = vector.load %arg12[%c0_57, %c0_58] : memref<84x10xf32, #tpu.memory_space<vmem>>, vector<84x10xf32>
    %cst_59 = arith.constant dense<0.000000e+00> : vector<2x10xf32>
    %108 = tpu.matmul %106, %107, %cst_59 {dimension_numbers = #tpu.dot_dimension_numbers<[1], [0], [0], [1], [0, 0, 1, 1], [], []>} : vector<2x84xf32>, vector<84x10xf32>, vector<2x10xf32> -> vector<2x10xf32>
    %c0_60 = arith.constant 0 : index
    %c0_61 = arith.constant 0 : index
    %109 = vector.load %arg13[%c0_60, %c0_61] : memref<1x10xf32, #tpu.memory_space<vmem>>, vector<1x10xf32>
    %110 = vector.broadcast %109 : vector<1x10xf32> to vector<2x10xf32>
    %111 = arith.addf %108, %110 : vector<2x10xf32>
    %c0_62 = arith.constant 0 : index
    %c0_63 = arith.constant 0 : index
    %112 = vector.load %arg14[%c0_62, %c0_63] : memref<2x10xf32, #tpu.memory_space<vmem>>, vector<2x10xf32>
    tpu.vector_store %arg14[%c0_62, %c0_63], %111 {strides = array<i32>} : memref<2x10xf32, #tpu.memory_space<vmem>>, vector<2x10xf32>,
    %113 = tpu.iota {dimensions = array<i32: 1>} : vector<1x10xi32>
    %cst_64 = arith.constant 0.000000e+00 : f32
    %114 = vector.broadcast %cst_64 : f32 to vector<1x1xf32>
    %115 = vector.extract_strided_slice %111 {offsets = [0, 0], sizes = [1, 10], strides = [1, 1]} : vector<2x10xf32> to vector<1x10xf32>
    %cst_65 = arith.constant dense<0xFF800000> : vector<1xf32>
    %116 = vector.multi_reduction <maximumf>, %115, %cst_65 [1] : vector<1x10xf32> to vector<1xf32>
    %117 = vector.shape_cast %116 : vector<1xf32> to vector<1x1xf32>
    %118 = vector.broadcast %117 : vector<1x1xf32> to vector<1x10xf32>
    %119 = arith.subf %115, %118 : vector<1x10xf32>
    %120 = math.exp %119 : vector<1x10xf32>
    %cst_66 = arith.constant dense<0.000000e+00> : vector<1xf32>
    %121 = vector.multi_reduction <add>, %120, %cst_66 [1] : vector<1x10xf32> to vector<1xf32>
    %122 = vector.shape_cast %121 : vector<1xf32> to vector<1x1xf32>
    %123 = math.log %122 : vector<1x1xf32>
    %124 = arith.addf %117, %123 : vector<1x1xf32>
    %c0_67 = arith.constant 0 : index
    %125 = memref.load %arg2[%c0_67] : memref<2xi32, #tpu.memory_space<smem>>
    %126 = vector.broadcast %125 : i32 to vector<1x10xi32>
    %127 = arith.cmpi eq, %113, %126 : vector<1x10xi32>
    %128 = arith.extui %127 : vector<1x10xi1> to vector<1x10xi32>
    %129 = arith.sitofp %128 : vector<1x10xi32> to vector<1x10xf32>
    %130 = arith.mulf %115, %129 : vector<1x10xf32>
    %cst_68 = arith.constant dense<0.000000e+00> : vector<1xf32>
    %131 = vector.multi_reduction <add>, %130, %cst_68 [1] : vector<1x10xf32> to vector<1xf32>
    %132 = vector.shape_cast %131 : vector<1xf32> to vector<1x1xf32>
    %133 = arith.subf %124, %132 : vector<1x1xf32>
    %134 = arith.addf %114, %133 : vector<1x1xf32>
    %135 = vector.extract_strided_slice %111 {offsets = [1, 0], sizes = [1, 10], strides = [1, 1]} : vector<2x10xf32> to vector<1x10xf32>
    %cst_69 = arith.constant dense<0xFF800000> : vector<1xf32>
    %136 = vector.multi_reduction <maximumf>, %135, %cst_69 [1] : vector<1x10xf32> to vector<1xf32>
    %137 = vector.shape_cast %136 : vector<1xf32> to vector<1x1xf32>
    %138 = vector.broadcast %137 : vector<1x1xf32> to vector<1x10xf32>
    %139 = arith.subf %135, %138 : vector<1x10xf32>
    %140 = math.exp %139 : vector<1x10xf32>
    %cst_70 = arith.constant dense<0.000000e+00> : vector<1xf32>
    %141 = vector.multi_reduction <add>, %140, %cst_70 [1] : vector<1x10xf32> to vector<1xf32>
    %142 = vector.shape_cast %141 : vector<1xf32> to vector<1x1xf32>
    %143 = math.log %142 : vector<1x1xf32>
    %144 = arith.addf %137, %143 : vector<1x1xf32>
    %c1_71 = arith.constant 1 : index
    %145 = memref.load %arg2[%c1_71] : memref<2xi32, #tpu.memory_space<smem>>
    %146 = vector.broadcast %145 : i32 to vector<1x10xi32>
    %147 = arith.cmpi eq, %113, %146 : vector<1x10xi32>
    %148 = arith.extui %147 : vector<1x10xi1> to vector<1x10xi32>
    %149 = arith.sitofp %148 : vector<1x10xi32> to vector<1x10xf32>
    %150 = arith.mulf %135, %149 : vector<1x10xf32>
    %cst_72 = arith.constant dense<0.000000e+00> : vector<1xf32>
    %151 = vector.multi_reduction <add>, %150, %cst_72 [1] : vector<1x10xf32> to vector<1xf32>
    %152 = vector.shape_cast %151 : vector<1xf32> to vector<1x1xf32>
    %153 = arith.subf %144, %152 : vector<1x1xf32>
    %154 = arith.addf %134, %153 : vector<1x1xf32>
    %cst_73 = arith.constant 5.000000e-01 : f32
    %155 = vector.broadcast %cst_73 : f32 to vector<1x1xf32>
    %156 = arith.mulf %154, %155 : vector<1x1xf32>
    %c0_74 = arith.constant 0 : index
    %c0_75 = arith.constant 0 : index
    %157 = vector.load %arg15[%c0_74, %c0_75] : memref<1x1xf32, #tpu.memory_space<vmem>>, vector<1x1xf32>
    tpu.vector_store %arg15[%c0_74, %c0_75], %156 {strides = array<i32>} : memref<1x1xf32, #tpu.memory_space<vmem>>, vector<1x1xf32>,
    return
  }
  func.func @transform_0(%arg0: i32) -> (i32, i32, i32) {
    %c0_i32 = arith.constant 0 : i32
    %c0_i32_0 = arith.constant 0 : i32
    %c0_i32_1 = arith.constant 0 : i32
    %c0_i32_2 = arith.constant 0 : i32
    return %c0_i32, %c0_i32_0, %c0_i32_1 : i32, i32, i32
  }
  func.func @transform_1(%arg0: i32) -> i32 {
    %c0_i32 = arith.constant 0 : i32
    %c0_i32_0 = arith.constant 0 : i32
    return %c0_i32 : i32
  }
  func.func @transform_2(%arg0: i32) -> (i32, i32, i32) {
    %c0_i32 = arith.constant 0 : i32
    %c0_i32_0 = arith.constant 0 : i32
    %c0_i32_1 = arith.constant 0 : i32
    %c0_i32_2 = arith.constant 0 : i32
    return %c0_i32, %c0_i32_0, %c0_i32_1 : i32, i32, i32
  }
  func.func @transform_3(%arg0: i32) -> (i32, i32, i32) {
    %c0_i32 = arith.constant 0 : i32
    %c0_i32_0 = arith.constant 0 : i32
    %c0_i32_1 = arith.constant 0 : i32
    %c0_i32_2 = arith.constant 0 : i32
    return %c0_i32, %c0_i32_0, %c0_i32_1 : i32, i32, i32
  }
  func.func @transform_4(%arg0: i32) -> (i32, i32) {
    %c0_i32 = arith.constant 0 : i32
    %c0_i32_0 = arith.constant 0 : i32
    %c0_i32_1 = arith.constant 0 : i32
    return %c0_i32, %c0_i32_0 : i32, i32
  }
  func.func @transform_5(%arg0: i32) -> (i32, i32) {
    %c0_i32 = arith.constant 0 : i32
    %c0_i32_0 = arith.constant 0 : i32
    %c0_i32_1 = arith.constant 0 : i32
    return %c0_i32, %c0_i32_0 : i32, i32
  }
  func.func @transform_6(%arg0: i32) -> (i32, i32) {
    %c0_i32 = arith.constant 0 : i32
    %c0_i32_0 = arith.constant 0 : i32
    %c0_i32_1 = arith.constant 0 : i32
    return %c0_i32, %c0_i32_0 : i32, i32
  }
  func.func @transform_7(%arg0: i32) -> (i32, i32) {
    %c0_i32 = arith.constant 0 : i32
    %c0_i32_0 = arith.constant 0 : i32
    %c0_i32_1 = arith.constant 0 : i32
    return %c0_i32, %c0_i32_0 : i32, i32
  }
  func.func @transform_8(%arg0: i32) -> (i32, i32) {
    %c0_i32 = arith.constant 0 : i32
    %c0_i32_0 = arith.constant 0 : i32
    %c0_i32_1 = arith.constant 0 : i32
    return %c0_i32, %c0_i32_0 : i32, i32
  }
  func.func @transform_9(%arg0: i32) -> (i32, i32) {
    %c0_i32 = arith.constant 0 : i32
    %c0_i32_0 = arith.constant 0 : i32
    %c0_i32_1 = arith.constant 0 : i32
    return %c0_i32, %c0_i32_0 : i32, i32
  }
  func.func @transform_10(%arg0: i32) -> (i32, i32) {
    %c0_i32 = arith.constant 0 : i32
    %c0_i32_0 = arith.constant 0 : i32
    %c0_i32_1 = arith.constant 0 : i32
    return %c0_i32, %c0_i32_0 : i32, i32
  }
  func.func @transform_11(%arg0: i32) -> (i32, i32) {
    %c0_i32 = arith.constant 0 : i32
    %c0_i32_0 = arith.constant 0 : i32
    %c0_i32_1 = arith.constant 0 : i32
    return %c0_i32, %c0_i32_0 : i32, i32
  }
  func.func @transform_12(%arg0: i32) -> (i32, i32) {
    %c0_i32 = arith.constant 0 : i32
    %c0_i32_0 = arith.constant 0 : i32
    %c0_i32_1 = arith.constant 0 : i32
    return %c0_i32, %c0_i32_0 : i32, i32
  }
  func.func @transform_13(%arg0: i32) -> (i32, i32) {
    %c0_i32 = arith.constant 0 : i32
    %c0_i32_0 = arith.constant 0 : i32
    %c0_i32_1 = arith.constant 0 : i32
    return %c0_i32, %c0_i32_0 : i32, i32
  }
  func.func @transform_14(%arg0: i32) -> (i32, i32) {
    %c0_i32 = arith.constant 0 : i32
    %c0_i32_0 = arith.constant 0 : i32
    %c0_i32_1 = arith.constant 0 : i32
    return %c0_i32, %c0_i32_0 : i32, i32
  }
}

</mosaic_0001>

<bundles_post_ra>
// kernel: lenet_forward.1
= control target key start
LH: loop header
LB: loop body
LE: loop exit
PB: predicated region body
PF: predicated region fallthrough
CT: control target
= control target key end

     0   :  { %s4531_s0 = inlined_call_operand.vmem [shape: f32[2,28,28], index: 0, kind: input, shape index: {}]   ;;  %s4532_s1 = inlined_call_operand.vmem [shape: s32[2], index: 1, kind: input, shape index: {}]   ;;  %s4533_s2 = inlined_call_operand.hbm [shape: f32[3,28,168], index: 2, kind: input, shape index: {}]   ;;  %s4534_s3 = inlined_call_operand.vmem [shape: f32[3,84,224], index: 3, kind: input, shape index: {}]   ;;  %s4535_s4 = inlined_call_operand.hbm [shape: f32[32,57], index: 4, kind: input, shape index: {}]   ;;  %s4536_s5 = inlined_call_operand.hbm [shape: f32[162,84], index: 5, kind: input, shape index: {}]   ;;  %s4537_s6 = inlined_call_operand.hbm [shape: f32[208,112], index: 6, kind: input, shape index: {}]   ;;  %s4538_s7 = inlined_call_operand.hbm [shape: f32[112,840], index: 7, kind: input, shape index: {}]   ;;  %s4539_s8 = inlined_call_operand.vmem [shape: f32[1,120], index: 8, kind: input, shape index: {}]   ;;  %s4540_s9 = inlined_call_operand.vmem [shape: f32[120,84], index: 9, kind: input, shape index: {}]   ;;  %s4541_s10 = inlined_call_operand.vmem [shape: f32[1,84], index: 10, kind: input, shape index: {}]   ;;  %s4542_s11 = inlined_call_operand.vmem [shape: f32[84,10], index: 11, kind: input, shape index: {}]   ;;  %s4543_s12 = inlined_call_operand.vmem [shape: f32[1,10], index: 12, kind: input, shape index: {}]   ;;  %s4544_s13 = inlined_call_operand.hbm [shape: f32[2,10], index: 13, kind: output, shape index: {0}]   ;;  %s4545_s14 = inlined_call_operand.hbm [shape: f32[1,1], index: 14, kind: output, shape index: {1}]  }
   0x1   :  { %4547 = sst [smem:[#allocation23_spill]] %s4545_s14 }
   0x2   :  { %20 = vsyncpa [#allocation6], 0 }
   0x3   :  { %21 = vsyncpa [#allocation4], 0 }
   0x4   :  { %22 = vsyncpa [#allocation9], 0 }
   0x5   :  { %23 = vsyncpa [#allocation12], 0 }
   0x6   :  { %24 = vsyncpa [#allocation5], 0 }
   0x7   :  { %25 = vsyncpa [#allocation16], 0  ;;  %s3489_s29 = smov [#allocation8]   ;;  %s3311_s17 = scalar_lea.hbm %s4535_s4, 512 }
   0x8   :  { %s57_s30 = sshll.u32 %s3489_s29, 4  ;;  %p3312_p0 = scmp.ne.s32.totalorder %s4535_s4, %s3311_s17  ;;  %s58_s30 = int_to_ptr.vmem [resolvable:$true] %s57_s30 }
   0x9   :  { %p3315_p1 = scmp.lt.u32.totalorder %s3311_s17, %s4535_s4 }
   0xb   :  { %p3317_p2 = pnand %p3315_p1, %p3312_p0 }
   0xd   :  { %3320 = shalt.err (!%p3317_p2)
}
   0xe   :  { %s3321_s22 = scalar_lea.vmem %s58_s30, 512  ;;  %p3326_p4 = scmp.lt.s32.totalorder %s58_s30, %s58_s30 }
   0xf   :  { %p3322_p3 = scmp.ne.s32.totalorder %s58_s30, %s3321_s22  ;;  %p3327_p5 = scmp.lt.s32.totalorder %s3321_s22, %s3321_s22 }
  0x11   :  { %p3328_p6 = por %p3327_p5, %p3326_p4 }
  0x13   :  { %p3329_p7 = pnand %p3328_p6, %p3322_p3 }
  0x15   :  { %3332 = shalt.err (!%p3329_p7)
}
  0x16   :  { %s3490_s23 = smov 128   ;;  %s3491_s24 = smov 8  }
  0x17   :  { %63 = dma.hbm_to_vmem [thread:$0]  %s4535_s4, 512, %s58_s30, [#allocation9], %s3490_s23, %s3490_s23, %s3491_s24  }
  0x18   :  { %s3492_s27 = smov [#allocation11]   ;;  %s34_s16 = sshll.u32 %s4532_s1, 4  ;;  %s35_s16 = int_to_ptr.vmem [resolvable:$true] %s34_s16 }
  0x19   :  { %s81_s28 = sshll.u32 %s3492_s27, 4  ;;  %s3333_s19 = scalar_lea.hbm %s4537_s6, 3328  ;;  %s82_s28 = int_to_ptr.vmem [resolvable:$true] %s81_s28 }
  0x1a   :  { %p3334_p8 = scmp.ne.s32.totalorder %s4537_s6, %s3333_s19  ;;  %p3337_p9 = scmp.lt.u32.totalorder %s3333_s19, %s4537_s6 }
  0x1c   :  { %p3339_p10 = pnand %p3337_p9, %p3334_p8 }
  0x1e   :  { %3342 = shalt.err (!%p3339_p10)
}
  0x1f   :  { %s3343_s4 = scalar_lea.vmem %s82_s28, 3328  ;;  %p3348_p12 = scmp.lt.s32.totalorder %s82_s28, %s82_s28 }
  0x20   :  { %p3344_p11 = scmp.ne.s32.totalorder %s82_s28, %s3343_s4  ;;  %p3349_p13 = scmp.lt.s32.totalorder %s3343_s4, %s3343_s4 }
  0x22   :  { %p3350_p0 = por %p3349_p13, %p3348_p12 }
  0x24   :  { %p3351_p1 = pnand %p3350_p0, %p3344_p11 }
  0x26   :  { %3354 = shalt.err (!%p3351_p1)
}
  0x27   :  { %87 = dma.hbm_to_vmem [thread:$0]  %s4537_s6, 3328, %s82_s28, [#allocation12], %s3490_s23, %s3490_s23, %s3491_s24  }
  0x28   :  { %s3355_s25 = scalar_lea.vmem %s35_s16, 16  ;;  %p3360_p3 = scmp.lt.s32.totalorder %s35_s16, %s35_s16 }
  0x29   :  { %p3356_p2 = scmp.ne.s32.totalorder %s35_s16, %s3355_s25  ;;  %p3361_p4 = scmp.lt.s32.totalorder %s3355_s25, %s3355_s25 }
  0x2b   :  { %p3362_p5 = por %p3361_p4, %p3360_p3 }
  0x2d   :  { %p3363_p6 = pnand %p3362_p5, %p3356_p2 }
  0x2f   :  { %3366 = shalt.err (!%p3363_p6)
}
  0x30   :  { %s3493_s14 = smov [#allocation3]   ;;  %s3494_s26 = smov [#allocation7]  }
  0x31   :  { %37 = dma.vmem_to_smem %s35_s16, 16, %s3493_s14, [#allocation6]  }
  0x32   :  { %s43_s27 = sshll.u32 %s3494_s26, 4  ;;  %s3367_s17 = scalar_lea.hbm %s4533_s2, 3072  ;;  %s44_s27 = int_to_ptr.vmem [resolvable:$true] %s43_s27 }
  0x33   :  { %p3368_p7 = scmp.ne.s32.totalorder %s4533_s2, %s3367_s17  ;;  %p3371_p8 = scmp.lt.u32.totalorder %s3367_s17, %s4533_s2 }
  0x35   :  { %p3373_p9 = pnand %p3371_p8, %p3368_p7 }
  0x37   :  { %3376 = shalt.err (!%p3373_p9)
}
  0x38   :  { %s3377_s20 = scalar_lea.vmem %s44_s27, 3072  ;;  %p3382_p11 = scmp.lt.s32.totalorder %s44_s27, %s44_s27 }
  0x39   :  { %p3378_p10 = scmp.ne.s32.totalorder %s44_s27, %s3377_s20  ;;  %p3383_p12 = scmp.lt.s32.totalorder %s3377_s20, %s3377_s20 }
  0x3b   :  { %p3384_p13 = por %p3383_p12, %p3382_p11 }
  0x3d   :  { %p3385_p0 = pnand %p3384_p13, %p3378_p10 }
  0x3f   :  { %3388 = shalt.err (!%p3385_p0)
}
  0x40   :  { %s3495_s16 = smov 256   ;;  %s3496_s21 = smov 16  }
  0x41   :  { %49 = dma.hbm_to_vmem [thread:$0]  %s4533_s2, 3072, %s44_s27, [#allocation4], %s3495_s16, %s3495_s16, %s3496_s21  }
  0x42   :  { %s3497_s1 = smov [#allocation10]   ;;  %s3498_s25 = smov [#allocation13]  }
  0x43   :  { %s69_s30 = sshll.u32 %s3497_s1, 4  ;;  %s93_s14 = sshll.u32 %s3498_s25, 4  ;;  %s70_s30 = int_to_ptr.vmem [resolvable:$true] %s69_s30  ;;  %s3634_s14 = int_to_ptr.vmem [resolvable:$true] %s93_s14 }
  0x44   :  { %s3389_s15 = scalar_lea.hbm %s4536_s5, 2688 }
  0x45   :  { %p3390_p1 = scmp.ne.s32.totalorder %s4536_s5, %s3389_s15  ;;  %p3393_p2 = scmp.lt.u32.totalorder %s3389_s15, %s4536_s5 }
  0x47   :  { %p3395_p3 = pnand %p3393_p2, %p3390_p1 }
  0x49   :  { %3398 = shalt.err (!%p3395_p3)
}
  0x4a   :  { %s3399_s2 = scalar_lea.vmem %s70_s30, 2688  ;;  %p3404_p5 = scmp.lt.s32.totalorder %s70_s30, %s70_s30 }
  0x4b   :  { %p3400_p4 = scmp.ne.s32.totalorder %s70_s30, %s3399_s2  ;;  %p3405_p6 = scmp.lt.s32.totalorder %s3399_s2, %s3399_s2 }
  0x4d   :  { %p3406_p7 = por %p3405_p6, %p3404_p5 }
  0x4f   :  { %p3407_p8 = pnand %p3406_p7, %p3400_p4 }
  0x51   :  { %3410 = shalt.err (!%p3407_p8)
}
  0x52   :  { %75 = dma.hbm_to_vmem [thread:$0]  %s4536_s5, 2688, %s70_s30, [#allocation9], %s3490_s23, %s3490_s23, %s3491_s24  }
  0x53   :  { %s3411_s22 = scalar_lea.hbm %s4538_s7, 12544 }
  0x54   :  { %p3412_p9 = scmp.ne.s32.totalorder %s4538_s7, %s3411_s22  ;;  %p3415_p10 = scmp.lt.u32.totalorder %s3411_s22, %s4538_s7 }
  0x56   :  { %p3417_p11 = pnand %p3415_p10, %p3412_p9 }
  0x58   :  { %3420 = shalt.err (!%p3417_p11)
}
  0x59   :  { %s3421_s29 = scalar_lea.vmem %s3634_s14, 12544  ;;  %p3426_p13 = scmp.lt.s32.totalorder %s3634_s14, %s3634_s14 }
  0x5a   :  { %p3422_p12 = scmp.ne.s32.totalorder %s3634_s14, %s3421_s29  ;;  %p3427_p0 = scmp.lt.s32.totalorder %s3421_s29, %s3421_s29 }
  0x5c   :  { %p3428_p1 = por %p3427_p0, %p3426_p13 }
  0x5e   :  { %p3429_p2 = pnand %p3428_p1, %p3422_p12 }
  0x60   :  { %3432 = shalt.err (!%p3429_p2)
}
  0x61   :  { %s3499_s5 = smov 896   ;;  %s3500_s23 = smov 56  }
  0x62   :  { %99 = dma.hbm_to_vmem [thread:$0]  %s4538_s7, 12544, %s3634_s14, [#allocation12], %s3499_s5, %s3499_s5, %s3500_s23  }
  0x63   :  { %3477 = dma.done.wait [#allocation6], 16  }
  0x64   :  { %3478 = vsyncadd [#allocation6], 4294967280 }
  0x65   :  { %3479 = dma.done.wait [#allocation4], 3072  }
  0x66   :  { %3480 = vsyncadd [#allocation4], 4294964224 }
  0x67   :  { %3481 = dma.done.wait [#allocation9], 3200  }
  0x68   :  { %3482 = vsyncadd [#allocation9], 4294964096 }
  0x69   :  { %3483 = dma.done.wait [#allocation12], 15872  }
  0x6a   :  { %3484 = vsyncadd [#allocation12], 4294951424 }
  0x6b   :  { %128 = sfence }
  0x6c   :  { %v174_v0 = vld [vmem:[#allocation7 + $0x48] sm:$0xff]  ;;  %v176_v1 = vld [vmem:[#allocation7 + $0x58] sm:$0xff]  ;;  %v173_v2 = vld [vmem:[#allocation7 + $0x40] sm:$0xff]  ;;  %vm221_vm0 = vcmask 1043456   ;;  %v3501_v7 = vmov 0.0   ;;  %vm129_vm1 = vcmask 228352  }
  0x6d   :  { %v2896_v3 = vpack.c.bf16 %v176_v1, %v174_v0  ;;  %v175_v4 = vld [vmem:[#allocation7 + $0x50] sm:$0xff]  ;;  %v178_v5 = vld [vmem:[#allocation7 + $0x68] sm:$0xff]  ;;  %v180_v6 = vld [vmem:[#allocation7 + $0x78] sm:$0xf]  ;;  %292 = vmatprep.mubr.f32.mxu0 %v3501_v7  ;;  %vm3502_vm2 = vmmov 1   ;;  %130 = vst.msk [vmem:[#allocation2] sm:$0xff] %vm129_vm1, %v3501_v7 }
  0x6e   :  { %v2898_v8 = vpack.c.bf16 %v175_v4, %v173_v2  ;;  %v2900_v9 = vpack.c.bf16 %v180_v6, %v178_v5  ;;  %vm3671_vm3 = vmpackc.low %vm221_vm0, %vm3502_vm2  ;;  %v177_v11 = vld [vmem:[#allocation7 + $0x60] sm:$0xff]  ;;  %v179_v12 = vld [vmem:[#allocation7 + $0x70] sm:$0xf]  ;;  %131 = vst.msk [vmem:[#allocation2 + $0x8] sm:$0xff] %vm129_vm1, %v3501_v7  ;;  %vm137_vm4 = vcmask 224256   ;;  %vm189_vm5 = vcmask 1046528  }
  0x6f   :  { %132 = vst.msk [vmem:[#allocation2 + $0x10] sm:$0xff] %vm129_vm1, %v3501_v7  ;;  %133 = vst.msk [vmem:[#allocation2 + $0x18] sm:$0xff] %vm129_vm1, %v3501_v7  ;;  %2897 = vmatprep.subr.bf16.mxu0 %v2896_v3  ;;  %v139_v13 = vld [vmem:[%s4531_s0] sm:$0xff]  ;;  %v140_v14 = vld [vmem:[%s4531_s0 + $0x8] sm:$0xff]  ;;  %v2903_v16 = vpack.c.bf16 %v179_v12, %v177_v11  ;;  %vm485_vm6 = vcmask 1045504   ;;  %vm885_vm7 = vcmask 1041408  }
  0x70   :  { %134 = vst.msk [vmem:[#allocation2 + $0x20] sm:$0xff] %vm129_vm1, %v3501_v7  ;;  %135 = vst.msk [vmem:[#allocation2 + $0x28] sm:$0xff] %vm129_vm1, %v3501_v7  ;;  %v141_v15 = vld [vmem:[%s4531_s0 + $0x10] sm:$0xff]  ;;  %2899 = vmatpush1.bf16.msra.mxu0 %v2898_v8  ;;  %v165_v17 = vld [vmem:[#allocation7 + $0x8] sm:$0xff]  ;;  %vm716_vm8 = vcmask 998400   ;;  %vm860_vm9 = vcmask 277504  }
  0x71   :  { %136 = vst.msk [vmem:[#allocation2 + $0x30] sm:$0xff] %vm129_vm1, %v3501_v7  ;;  %143 = vst.msk [vmem:[#allocation2 + $0x1] sm:$0xff] %vm129_vm1, %v139_v13  ;;  %v167_v18 = vld [vmem:[#allocation7 + $0x18] sm:$0xff]  ;;  %2902 = vmatprep.subr.msk.bf16.mxu0 %vm3671_vm3, %v2900_v9  ;;  %v2585_v21 = vld [vmem:[%s4531_s0 + $0x20] sm:$0xff]  ;;  %vm994_vm10 = vcmask 465920   ;;  %vm1007_vm11 = vcmask 1040384  }
  0x72   :  { %138 = vst.msk [vmem:[#allocation2 + $0x38] sm:$0xf] %vm137_vm4, %v3501_v7  ;;  %v2906_v19 = vpack.c.bf16 %v167_v18, %v165_v17  ;;  %v142_v20 = vld [vmem:[%s4531_s0 + $0x18] sm:$0xf]  ;;  %v2586_v22 = vld [vmem:[%s4531_s0 + $0x28] sm:$0xff]  ;;  %v2587_v23 = vld [vmem:[%s4531_s0 + $0x30] sm:$0xff] }
  0x73   :  { %144 = vst.msk [vmem:[#allocation2 + $0x9] sm:$0xff] %vm129_vm1, %v140_v14  ;;  %145 = vst.msk [vmem:[#allocation2 + $0x11] sm:$0xff] %vm129_vm1, %v141_v15  ;;  %v2588_v24 = vld [vmem:[%s4531_s0 + $0x38] sm:$0xf]  ;;  %v164_v25 = vld [vmem:[#allocation7] sm:$0xff]  ;;  %s3504_s0 = smov 122  }
  0x74   :  { %146 = vst.msk [vmem:[#allocation2 + $0x19] sm:$0xf] %vm137_vm4, %v142_v20  ;;  %155 = vst.msk [vmem:[#allocation2 + $0x37] sm:$0xf] %vm137_vm4, %v2588_v24  ;;  %2905 = vmatpush1.bf16.msk.msra.mxu0 %vm3671_vm3, %v2903_v16  ;;  %v166_v26 = vld [vmem:[#allocation7 + $0x10] sm:$0xff]  ;;  %v169_v27 = vld [vmem:[#allocation7 + $0x28] sm:$0xff] }
  0x75   :  { %152 = vst.msk [vmem:[#allocation2 + $0x1f] sm:$0xff] %vm129_vm1, %v2585_v21  ;;  %153 = vst.msk [vmem:[#allocation2 + $0x27] sm:$0xff] %vm129_vm1, %v2586_v22  ;;  %2907 = vmatprep.subr.bf16.mxu0 %v2906_v19  ;;  %v171_v28 = vld [vmem:[#allocation7 + $0x38] sm:$0xf]  ;;  %v168_v29 = vld [vmem:[#allocation7 + $0x20] sm:$0xff]  ;;  %v2908_v33 = vpack.c.bf16 %v166_v26, %v164_v25  ;;  %v3503_v24 = vmov 0.0|0.0  }
  0x76   :  { %154 = vst.msk [vmem:[#allocation2 + $0x2f] sm:$0xff] %vm129_vm1, %v2587_v23  ;;  %v170_v38 = vld [vmem:[#allocation7 + $0x30] sm:$0xf]  ;;  %v2910_v41 = vpack.c.bf16 %v171_v28, %v169_v27  ;;  %v478_v44 = vld [vmem:[#allocation7 + $0x88] sm:$0xff]  ;;  %v480_v45 = vld [vmem:[#allocation7 + $0x98] sm:$0xff]  ;;  %2926 = vmatprep.subr.bf16.mxu1 %v3503_v24  ;;  %vm1152_vm13 = vcmask 687104  }
  0x77   :  { %v2913_v49 = vpack.c.bf16 %v170_v38, %v168_v29  ;;  %v2916_v57 = vpack.c.bf16 %v480_v45, %v478_v44  ;;  %v477_v13 = vld [vmem:[#allocation7 + $0x80] sm:$0xff]  ;;  %v479_v14 = vld [vmem:[#allocation7 + $0x90] sm:$0xff]  ;;  %v482_v15 = vld [vmem:[#allocation7 + $0xa8] sm:$0xff]  ;;  %vm1532_vm14 = vcmask 916480   ;;  %vm1617_vm15 = vcmask 654336   ;;  %s3506_s29 = smov 24  }
  0x78   :  { %v3727_v30 = vld [vmem:[#allocation2] sm:$0xff]  ;;  %v484_v16 = vld [vmem:[#allocation7 + $0xb8] sm:$0xf]  ;;  %v2918_v17 = vpack.c.bf16 %v479_v14, %v477_v13  ;;  %v483_v20 = vld [vmem:[#allocation7 + $0xb0] sm:$0xf]  ;;  %s3507_s5 = smov 32  }
  0x79   :  { %v190_v34 = vrot.slane %v3727_v30, 1  ;;  %v486_v36 = vrot.slane %v3727_v30, 2  ;;  %v2920_v18 = vpack.c.bf16 %v484_v16, %v482_v15  ;;  %v481_v19 = vld [vmem:[#allocation7 + $0xa0] sm:$0xff]  ;;  %v840_v22 = vld [vmem:[#allocation10 + $0x8] sm:$0xff]  ;;  %v841_v23 = vld [vmem:[#allocation10 + $0x10] sm:$0xff]  ;;  %s3508_s26 = smov 40  }
  0x7a   :  { %v3729_v31 = vld [vmem:[#allocation2 + $0x8] sm:$0xff]  ;;  %v3731_v32 = vld [vmem:[#allocation2 + $0x10] sm:$0xff]  ;;  %v2923_v21 = vpack.c.bf16 %v483_v20, %v481_v19  ;;  %v839_v10 = vld [vmem:[#allocation10] sm:$0xff]  ;;  %s3509_s30 = smov 48   ;;  %vm2216_vm4 = vcmask 195584   ;;  %s2722_s19 = sld [smem:[#allocation3 + $0x1]] }
  0x7b   :  { %v191_v35 = vrot.slane %v3729_v31, 1  ;;  %v487_v37 = vrot.slane %v3729_v31, 2  ;;  %v193_v39 = vrot.slane %v3731_v32, 1  ;;  %v489_v42 = vrot.slane %v3731_v32, 2  ;;  %v3758_v56 = vld [vmem:[#allocation2 + $0x38] sm:$0xf]  ;;  %vm2969_vm12 = vmpackc.low %vm1007_vm11, %vm3502_vm2 }
  0x7c   :  { %v3738_v40 = vld [vmem:[#allocation2 + $0x18] sm:$0xff]  ;;  %v160_v51 = vld [vmem:[#allocation2 + $0x20] sm:$0xff]  ;;  %v499_v61 = vrot.slane %v3758_v56, 2  ;;  %v203_v11 = vrot.slane %v3758_v56, 1  ;;  %v2927_v25 = vpack.c.bf16 %v840_v22, %v839_v10  ;;  %v844_v29 = vld [vmem:[#allocation10 + $0x28] sm:$0xff]  ;;  %vm2173_vm2 = vcmask 64512  }
  0x7d   :  { %v192_v43 = vsel %vm189_vm5, %v190_v34, %v191_v35  ;;  %v3743_v46 = vsel %vm485_vm6, %v486_v36, %v487_v37  ;;  %v491_v47 = vrot.slane %v3738_v40, 2  ;;  %v195_v48 = vrot.slane %v3738_v40, 1  ;;  %v161_v54 = vld [vmem:[#allocation2 + $0x28] sm:$0xff]  ;;  %v162_v55 = vld [vmem:[#allocation2 + $0x30] sm:$0xff]  ;;  %v842_v26 = vld [vmem:[#allocation10 + $0x18] sm:$0xff] }
  0x7e   :  { %2591 = vmatmul.mubr.msk.f32.vlgmr.msra.gmra.mrb[0].mxu0 %vm129_vm1, %v192_v43  ;;  %v194_v50 = vsel %vm189_vm5, %v191_v35, %v193_v39  ;;  %v3751_v52 = vsel %vm485_vm6, %v487_v37, %v489_v42  ;;  %v493_v58 = vrot.slane %v160_v51, 2  ;;  %v495_v59 = vrot.slane %v161_v54, 2  ;;  %2928 = vmatpush1.bf16.msra.mxu1 %v2927_v25  ;;  %v843_v28 = vld [vmem:[#allocation10 + $0x20] sm:$0xff]  ;;  %v848_v35 = vld [vmem:[#allocation10 + $0x48] sm:$0xff]  ;;  %v849_v37 = vld [vmem:[#allocation10 + $0x50] sm:$0xff] }
  0x7f   :  { %298 = vmatprep.mubr.f32.mxu0 %v3501_v7  ;;  %2909 = vmatpush1.bf16.msra.mxu0 %v2908_v33  ;;  %v3754_v53 = vsel %vm485_vm6, %v489_v42, %v491_v47  ;;  %v497_v60 = vrot.slane %v162_v55, 2  ;;  %v196_v62 = vsel %vm189_vm5, %v193_v39, %v195_v48  ;;  %v197_v0 = vrot.slane %v160_v51, 1  ;;  %v847_v34 = vld [vmem:[#allocation10 + $0x40] sm:$0xff]  ;;  %v850_v38 = vld [vmem:[#allocation10 + $0x58] sm:$0xff]  ;;  %v853_v43 = vld [vmem:[#allocation10 + $0x70] sm:$0xff] }
  0x80   :  { %2912 = vmatprep.subr.msk.bf16.mxu0 %vm3671_vm3, %v2910_v41  ;;  %v494_v63 = vsel %vm485_vm6, %v491_v47, %v493_v58  ;;  %v496_v1 = vsel %vm485_vm6, %v493_v58, %v495_v59  ;;  %v199_v5 = vrot.slane %v161_v54, 1  ;;  %v201_v8 = vrot.slane %v162_v55, 1  ;;  %2929 = vmatprep.subr.bf16.mxu1 %v3503_v24  ;;  %v852_v41 = vld [vmem:[#allocation10 + $0x68] sm:$0xff]  ;;  %v854_v44 = vld [vmem:[#allocation10 + $0x78] sm:$0xff] }
  0x81   :  { %v498_v2 = vsel %vm485_vm6, %v495_v59, %v497_v60  ;;  %v500_v3 = vsel %vm485_vm6, %v497_v60, %v499_v61  ;;  %v198_v4 = vsel %vm189_vm5, %v195_v48, %v197_v0  ;;  %v2930_v27 = vpack.c.bf16 %v842_v26, %v841_v23  ;;  %v856_v47 = vld [vmem:[#allocation10 + $0x88] sm:$0xff] }
  0x82   :  { %2592 = vmatmul.mubr.msk.f32.gmra.mrb[2].mxu0 %vm129_vm1, %v194_v50  ;;  %v200_v6 = vsel %vm189_vm5, %v197_v0, %v199_v5  ;;  %v202_v9 = vsel %vm189_vm5, %v199_v5, %v201_v8  ;;  %v204_v12 = vsel %vm189_vm5, %v201_v8, %v203_v11  ;;  %v2939_v36 = vpack.c.bf16 %v848_v35, %v847_v34  ;;  %v858_v50 = vld [vmem:[#allocation10 + $0x98] sm:$0xff] }
  0x83   :  { %304 = vmatprep.mubr.f32.mxu0 %v3501_v7  ;;  %2915 = vmatpush1.bf16.msk.msra.mxu0 %vm3671_vm3, %v2913_v49  ;;  %v2942_v39 = vpack.c.bf16 %v850_v38, %v849_v37  ;;  %v2948_v45 = vpack.c.bf16 %v854_v44, %v853_v43  ;;  %v857_v49 = vld [vmem:[#allocation10 + $0x90] sm:$0xff] }
  0x84   :  { %2917 = vmatprep.subr.bf16.mxu0 %v2916_v57  ;;  %2931 = vmatpush1.bf16.msra.mxu1 %v2930_v27 }
  0x85   :  { %2932 = vmatprep.subr.bf16.mxu1 %v3503_v24 }
  0x86   :  { %2593 = vmatmul.mubr.msk.f32.gmra.mrb[4].mxu0 %vm129_vm1, %v196_v62 }
  0x87   :  { %310 = vmatprep.mubr.f32.mxu0 %v3501_v7 }
  0x8a   :  { %2594 = vmatmul.mubr.msk.f32.gmra.mrb[6].mxu0 %vm129_vm1, %v198_v4 }
  0x8b   :  { %316 = vmatprep.mubr.f32.mxu0 %v3501_v7 }
  0x8e   :  { %2595 = vmatmul.mubr.msk.f32.gmra.mrb[8].mxu0 %vm129_vm1, %v200_v6 }
  0x8f   :  { %322 = vmatprep.mubr.f32.mxu0 %v3501_v7 }
  0x92   :  { %2596 = vmatmul.mubr.msk.f32.gmra.mrb[10].mxu0 %vm129_vm1, %v202_v9 }
  0x93   :  { %328 = vmatprep.mubr.f32.mxu0 %v3501_v7 }
  0x96   :  { %2597 = vmatmul.mubr.msk.f32.gmra.mrb[12].mxu0 %vm129_vm1, %v204_v12 }
  0x97   :  { %334 = vmatprep.mubr.f32.mxu0 %v3501_v7 }
  0x9a   :  { %2598 = vmatmul.mubr.msk.f32.gmra.mrb[14].mxu0 %vm129_vm1, %v203_v11 }
  0x9b   :  { %427 = vmatprep.mubr.f32.mxu0 %v3501_v7 }
  0x9e   :  { %2601 = vmatmul.mubr.msk.f32.vlgmr.msra.gmra.mrb[0].mxu0 %vm129_vm1, %v3727_v30  ;;  %v2933_v30 = vpack.c.bf16 %v844_v29, %v843_v28 }
  0x9f   :  { %433 = vmatprep.mubr.f32.mxu0 %v3501_v7  ;;  %2919 = vmatpush1.bf16.msra.mxu0 %v2918_v17 }
  0xa0   :  { %2922 = vmatprep.subr.msk.bf16.mxu0 %vm3671_vm3, %v2920_v18  ;;  %2934 = vmatpush1.bf16.msra.mxu1 %v2933_v30 }
  0xa1   :  { %2935 = vmatprep.subr.bf16.mxu1 %v3503_v24 }
  0xa2   :  { %2602 = vmatmul.mubr.msk.f32.gmra.mrb[2].mxu0 %vm129_vm1, %v3729_v31  ;;  %v845_v31 = vld [vmem:[#allocation10 + $0x30] sm:$0xff] }
  0xa3   :  { %439 = vmatprep.mubr.f32.mxu0 %v3501_v7  ;;  %2925 = vmatpush1.bf16.msk.msra.mxu0 %vm3671_vm3, %v2923_v21  ;;  %vm2195_vm3 = vcmask 130048  }
  0xa4   :  { %3034 = vmatprep.subr.bf16.mxu0 %v3503_v24 }
  0xa6   :  { %2603 = vmatmul.mubr.msk.f32.gmra.mrb[4].mxu0 %vm129_vm1, %v3731_v32  ;;  %v846_v32 = vld [vmem:[#allocation10 + $0x38] sm:$0xff] }
  0xa7   :  { %445 = vmatprep.mubr.f32.mxu0 %v3501_v7  ;;  %v2936_v33 = vpack.c.bf16 %v846_v32, %v845_v31 }
  0xa9   :  { %2937 = vmatpush1.bf16.msra.mxu1 %v2936_v33 }
  0xaa   :  { %2604 = vmatmul.mubr.msk.f32.gmra.mrb[6].mxu0 %vm129_vm1, %v3738_v40  ;;  %2938 = vmatprep.subr.bf16.mxu1 %v3503_v24  ;;  %v851_v40 = vld [vmem:[#allocation10 + $0x60] sm:$0xff] }
  0xab   :  { %451 = vmatprep.mubr.f32.mxu0 %v3501_v7  ;;  %v2945_v42 = vpack.c.bf16 %v852_v41, %v851_v40 }
  0xad   :  { %2940 = vmatpush1.bf16.msra.mxu1 %v2939_v36 }
  0xae   :  { %2605 = vmatmul.mubr.msk.f32.gmra.mrb[8].mxu0 %vm129_vm1, %v160_v51  ;;  %2941 = vmatprep.subr.bf16.mxu1 %v3503_v24  ;;  %v2954_v51 = vpack.c.bf16 %v858_v50, %v857_v49 }
  0xaf   :  { %457 = vmatprep.mubr.f32.mxu0 %v3501_v7 }
  0xb1   :  { %2943 = vmatpush1.bf16.msra.mxu1 %v2942_v39 }
  0xb2   :  { %2606 = vmatmul.mubr.msk.f32.gmra.mrb[10].mxu0 %vm129_vm1, %v161_v54  ;;  %2944 = vmatprep.subr.bf16.mxu1 %v3503_v24 }
  0xb3   :  { %463 = vmatprep.mubr.f32.mxu0 %v3501_v7 }
  0xb5   :  { %2946 = vmatpush1.bf16.msra.mxu1 %v2945_v42 }
  0xb6   :  { %2607 = vmatmul.mubr.msk.f32.gmra.mrb[12].mxu0 %vm129_vm1, %v162_v55  ;;  %2947 = vmatprep.subr.bf16.mxu1 %v3503_v24 }
  0xb7   :  { %469 = vmatprep.mubr.f32.mxu0 %v3501_v7 }
  0xb9   :  { %2949 = vmatpush1.bf16.msra.mxu1 %v2948_v45 }
  0xba   :  { %2608 = vmatmul.mubr.msk.f32.gmra.mrb[14].mxu0 %vm129_vm1, %v3758_v56  ;;  %2950 = vmatprep.subr.bf16.mxu1 %v3503_v24  ;;  %v859_v56 = vld [vmem:[#allocation10 + $0xa0] sm:$0x3] }
  0xbb   :  { %587 = vmatprep.mubr.f32.mxu0 %v3501_v7 }
  0xbe   :  { %2611 = vmatmul.mubr.msk.f32.vlgmr.msra.gmra.mrb[0].mxu0 %vm129_vm1, %v3743_v46  ;;  %v855_v46 = vld [vmem:[#allocation10 + $0x80] sm:$0xff] }
  0xbf   :  { %593 = vmatprep.mubr.f32.mxu0 %v3501_v7  ;;  %v2951_v48 = vpack.c.bf16 %v856_v47, %v855_v46 }
  0xc1   :  { %2952 = vmatpush1.bf16.msra.mxu1 %v2951_v48 }
  0xc2   :  { %2612 = vmatmul.mubr.msk.f32.gmra.mrb[2].mxu0 %vm129_vm1, %v3751_v52  ;;  %2953 = vmatprep.subr.bf16.mxu1 %v3503_v24 }
  0xc3   :  { %599 = vmatprep.mubr.f32.mxu0 %v3501_v7 }
  0xc5   :  { %2955 = vmatpush1.bf16.msra.mxu1 %v2954_v51 }
  0xc6   :  { %2613 = vmatmul.mubr.msk.f32.gmra.mrb[4].mxu0 %vm129_vm1, %v3754_v53  ;;  %929 = vmatprep.subr.mxu1 %v3501_v7 }
  0xc7   :  { %605 = vmatprep.mubr.f32.mxu0 %v3501_v7 }
  0xc9   :  { %2619 = vmatpush1.msk.msra.mxu1 %vm885_vm7, %v859_v56  ;;  %vm2277_vm7 = vcmask 392192  }
  0xca   :  { %2614 = vmatmul.mubr.msk.f32.gmra.mrb[6].mxu0 %vm129_vm1, %v494_v63 }
  0xcb   :  { %611 = vmatprep.mubr.f32.mxu0 %v3501_v7 }
  0xce   :  { %2615 = vmatmul.mubr.msk.f32.gmra.mrb[8].mxu0 %vm129_vm1, %v496_v1 }
  0xcf   :  { %617 = vmatprep.mubr.f32.mxu0 %v3501_v7 }
  0xd2   :  { %2616 = vmatmul.mubr.msk.f32.gmra.mrb[10].mxu0 %vm129_vm1, %v498_v2 }
  0xd3   :  { %623 = vmatprep.mubr.f32.mxu0 %v3501_v7 }
  0xd6   :  { %2617 = vmatmul.mubr.msk.f32.gmra.mrb[12].mxu0 %vm129_vm1, %v500_v3 }
  0xd7   :  { %629 = vmatprep.mubr.f32.mxu0 %v3501_v7 }
  0xda   :  { %2618 = vmatmul.mubr.msk.f32.gmra.mrb[14].mxu0 %vm129_vm1, %v499_v61  ;;  %vm3510_vm1 = vmmov 0  }
 0x191   :  { %v3845_v52 = vpop.f32.mrb[0].mxu0 }
 0x192   :  { %v591_v53 = vpop.f32.mrb[1].mxu0  ;;  %v652_v57 = vmax.f32 %v3845_v52, 0.0 }
 0x193   :  { %v653_v54 = vmax.f32 %v591_v53, 0.0 }
 0x195   :  { %686 = vrot.lane.b32.xlu0 %v653_v54, %s3504_s0  ;;  %v595_v55 = vpop.f32.mrb[2].mxu0 }
 0x196   :  { %v654_v58 = vmax.f32 %v595_v55, 0.0  ;;  %v597_v59 = vpop.f32.mrb[3].mxu0 }
 0x197   :  { %v655_v60 = vmax.f32 %v597_v59, 0.0 }
 0x198   :  { %v3293_v61 = vpack.i.bf16 %v654_v58, %v652_v57 }
 0x199   :  { %690 = vrot.lane.b32.xlu1 %v655_v60, %s3504_s0  ;;  %v601_v62 = vpop.f32.mrb[4].mxu0 }
 0x19a   :  { %v656_v63 = vmax.f32 %v601_v62, 0.0  ;;  %3294 = vrot.lane.b32.xlu0 %v3293_v61, %s3504_s0  ;;  %v603_v0 = vpop.f32.mrb[5].mxu0 }
 0x19b   :  { %v657_v1 = vmax.f32 %v603_v0, 0.0 }
 0x19d   :  { %692 = vrot.lane.b32.xlu1 %v656_v63, %s3504_s0  ;;  %v3853_v2 = vpop.f32.mrb[6].mxu0 }
 0x19e   :  { %v658_v3 = vmax.f32 %v3853_v2, 0.0  ;;  %694 = vrot.lane.b32.xlu0 %v657_v1, %s3504_s0  ;;  %v609_v4 = vpop.f32.mrb[7].mxu0 }
 0x19f   :  { %v659_v5 = vmax.f32 %v609_v4, 0.0 }
 0x1a1   :  { %696 = vrot.lane.b32.xlu1 %v658_v3, %s3504_s0  ;;  %v3860_v6 = vpop.f32.mrb[8].mxu0 }
 0x1a2   :  { %v660_v8 = vmax.f32 %v3860_v6, 0.0  ;;  %698 = vrot.lane.b32.xlu0 %v659_v5, %s3504_s0  ;;  %v3864_v9 = vpop.f32.mrb[9].mxu0 }
 0x1a3   :  { %v661_v11 = vmax.f32 %v3864_v9, 0.0 }
 0x1a5   :  { %700 = vrot.lane.b32.xlu1 %v660_v8, %s3504_s0  ;;  %v3870_v12 = vpop.f32.mrb[10].mxu0 }
 0x1a6   :  { %v662_v13 = vmax.f32 %v3870_v12, 0.0  ;;  %702 = vrot.lane.b32.xlu0 %v661_v11, %s3504_s0  ;;  %v3876_v14 = vpop.f32.mrb[11].mxu0 }
 0x1a7   :  { %v663_v15 = vmax.f32 %v3876_v14, 0.0 }
 0x1a9   :  { %704 = vrot.lane.b32.xlu1 %v662_v13, %s3504_s0  ;;  %v3882_v16 = vpop.f32.mrb[12].mxu0 }
 0x1aa   :  { %v664_v17 = vmax.f32 %v3882_v16, 0.0  ;;  %706 = vrot.lane.b32.xlu0 %v663_v15, %s3504_s0  ;;  %v3888_v18 = vpop.f32.mrb[13].mxu0 }
 0x1ab   :  { %v665_v19 = vmax.f32 %v3888_v18, 0.0 }
 0x1ad   :  { %708 = vrot.lane.b32.xlu1 %v664_v17, %s3504_s0  ;;  %v3894_v20 = vpop.f32.mrb[14].mxu0 }
 0x1ae   :  { %v666_v21 = vmax.f32 %v3894_v20, 0.0  ;;  %710 = vrot.lane.b32.xlu0 %v665_v19, %s3504_s0  ;;  %v3900_v10 = vpop.f32.mrb[15].mxu0 }
 0x1af   :  { %v667_v22 = vmax.f32 %v3900_v10, 0.0 }
 0x1b1   :  { %712 = vrot.lane.b32.xlu1 %v666_v21, %s3504_s0 }
 0x1b2   :  { %714 = vrot.lane.b32.xlu0 %v667_v22, %s3504_s0 }
 0x207   :  { %v687_v23 = vpop.permute.xlu0 %686 }
 0x208   :  { %v742_v25 = vmax.f32 %v653_v54, %v687_v23 }
 0x20a   :  { %v776_v31 = vrot.slane %v742_v25, 1 }
 0x20b   :  { %v691_v26 = vpop.permute.xlu1 %690 }
 0x20c   :  { %v744_v27 = vmax.f32 %v655_v60, %v691_v26  ;;  %v3295_v28 = vpop.permute.xlu0 %3294 }
 0x20d   :  { %v3297_v29 = vunpack.i.h.bf16 %v3295_v28  ;;  %v3296_v30 = vunpack.i.l.bf16 %v3295_v28 }
 0x20e   :  { %v777_v32 = vrot.slane %v744_v27, 1 }
 0x20f   :  { %v717_v33 = vsel %vm716_vm8, %v3296_v30, %v687_v23  ;;  %v718_v34 = vsel %vm716_vm8, %v3297_v29, %v691_v26  ;;  %v693_v35 = vpop.permute.xlu1 %692 }
 0x210   :  { %v743_v36 = vmax.f32 %v654_v58, %v718_v34  ;;  %v695_v37 = vpop.permute.xlu0 %694  ;;  %v778_v38 = vsel %vm189_vm5, %v776_v31, %v777_v32  ;;  %v741_v39 = vmax.f32 %v652_v57, %v717_v33 }
 0x211   :  { %v719_v40 = vsel %vm716_vm8, %v693_v35, %v695_v37  ;;  %v746_v41 = vmax.f32 %v657_v1, %v695_v37  ;;  %v820_v42 = vmax.f32 %v742_v25, %v778_v38 }
 0x212   :  { %v774_v43 = vrot.slane %v743_v36, 1  ;;  %v745_v44 = vmax.f32 %v656_v63, %v719_v40  ;;  %v773_v45 = vrot.slane %v741_v39, 1 }
 0x213   :  { %v781_v46 = vrot.slane %v746_v41, 1  ;;  %2620 = vmatprep.mubr.msk.f32.mxu1 %vm860_vm9, %v820_v42  ;;  %v697_v47 = vpop.permute.xlu1 %696 }
 0x214   :  { %v779_v48 = vrot.slane %v745_v44, 1  ;;  %v699_v49 = vpop.permute.xlu0 %698  ;;  %v775_v50 = vsel %vm189_vm5, %v773_v45, %v774_v43 }
 0x215   :  { %v782_v51 = vsel %vm189_vm5, %v777_v32, %v781_v46  ;;  %v720_v52 = vsel %vm716_vm8, %v697_v47, %v699_v49  ;;  %v748_v53 = vmax.f32 %v659_v5, %v699_v49  ;;  %v819_v54 = vmax.f32 %v741_v39, %v775_v50 }
 0x216   :  { %v747_v55 = vmax.f32 %v658_v3, %v720_v52  ;;  %v822_v56 = vmax.f32 %v744_v27, %v782_v51  ;;  %v780_v57 = vsel %vm189_vm5, %v774_v43, %v779_v48 }
 0x217   :  { %v785_v58 = vrot.slane %v748_v53, 1  ;;  %954 = vmatmul.mubr.f32.vlgmr.msra.gmra.mrb[0].mxu1 %v819_v54  ;;  %v701_v59 = vpop.permute.xlu1 %700  ;;  %v821_v1 = vmax.f32 %v743_v36, %v780_v57 }
 0x218   :  { %v783_v60 = vrot.slane %v747_v55, 1  ;;  %2621 = vmatprep.mubr.msk.f32.mxu1 %vm860_vm9, %v822_v56  ;;  %v703_v61 = vpop.permute.xlu0 %702 }
 0x219   :  { %v786_v62 = vsel %vm189_vm5, %v781_v46, %v785_v58  ;;  %v721_v63 = vsel %vm716_vm8, %v701_v59, %v703_v61  ;;  %v750_v0 = vmax.f32 %v661_v11, %v703_v61 }
 0x21a   :  { %v749_v2 = vmax.f32 %v660_v8, %v721_v63  ;;  %v824_v3 = vmax.f32 %v746_v41, %v786_v62  ;;  %v784_v4 = vsel %vm189_vm5, %v779_v48, %v783_v60 }
 0x21b   :  { %v789_v5 = vrot.slane %v750_v0, 1  ;;  %959 = vmatmul.mubr.f32.gmra.mrb[2].mxu1 %v821_v1  ;;  %v705_v23 = vpop.permute.xlu1 %704  ;;  %v823_v11 = vmax.f32 %v745_v44, %v784_v4  ;;  %v2636_v4 = vld [vmem:[%s4534_s3 + $0xc8] sm:$0xff] }
 0x21c   :  { %v787_v25 = vrot.slane %v749_v2, 1  ;;  %2622 = vmatprep.mubr.msk.f32.mxu1 %vm860_vm9, %v824_v3  ;;  %v707_v26 = vpop.permute.xlu0 %706  ;;  %v2634_v3 = vld [vmem:[%s4534_s3 + $0xb8] sm:$0xff] }
 0x21d   :  { %v790_v27 = vsel %vm189_vm5, %v785_v58, %v789_v5  ;;  %v722_v28 = vsel %vm716_vm8, %v705_v23, %v707_v26  ;;  %v752_v9 = vmax.f32 %v663_v15, %v707_v26  ;;  %v2974_v26 = vpack.c.bf16 %v2636_v4, %v2634_v3 }
 0x21e   :  { %v751_v6 = vmax.f32 %v662_v13, %v722_v28  ;;  %v826_v8 = vmax.f32 %v748_v53, %v790_v27  ;;  %v788_v29 = vsel %vm189_vm5, %v783_v60, %v787_v25  ;;  %v2633_v27 = vld [vmem:[%s4534_s3 + $0xb0] sm:$0xff]  ;;  %v2635_v28 = vld [vmem:[%s4534_s3 + $0xc0] sm:$0xff] }
 0x21f   :  { %v793_v30 = vrot.slane %v752_v9, 1  ;;  %964 = vmatmul.mubr.f32.gmra.mrb[4].mxu1 %v823_v11  ;;  %v709_v31 = vpop.permute.xlu1 %708  ;;  %v825_v15 = vmax.f32 %v747_v55, %v788_v29  ;;  %v2640_v11 = vld [vmem:[%s4534_s3 + $0xe8] sm:$0xff]  ;;  %v837_v29 = vld [vmem:[#allocation8 + $0x10] sm:$0xff] }
 0x220   :  { %v791_v32 = vrot.slane %v751_v6, 1  ;;  %2623 = vmatprep.mubr.msk.f32.mxu1 %vm860_vm9, %v826_v8  ;;  %v711_v33 = vpop.permute.xlu0 %710  ;;  %v2976_v8 = vpack.c.bf16 %v2635_v28, %v2633_v27  ;;  %v1106_v27 = vld [vmem:[%s4534_s3 + $0x50] sm:$0xff] }
 0x221   :  { %v794_v34 = vsel %vm189_vm5, %v789_v5, %v793_v30  ;;  %v723_v35 = vsel %vm716_vm8, %v709_v31, %v711_v33  ;;  %v754_v14 = vmax.f32 %v665_v19, %v711_v33  ;;  %v2637_v31 = vld [vmem:[%s4534_s3 + $0xd0] sm:$0xff]  ;;  %v2642_v33 = vld [vmem:[%s4534_s3 + $0xf8] sm:$0xff] }
 0x222   :  { %v753_v12 = vmax.f32 %v664_v17, %v723_v35  ;;  %v828_v13 = vmax.f32 %v750_v0, %v794_v34  ;;  %v792_v36 = vsel %vm189_vm5, %v787_v25, %v791_v32  ;;  %v2644_v34 = vld [vmem:[%s4534_s3 + $0x108] sm:$0xff]  ;;  %v838_v35 = vld [vmem:[#allocation8 + $0x18] sm:$0xff] }
 0x223   :  { %v797_v37 = vrot.slane %v754_v14, 1  ;;  %969 = vmatmul.mubr.f32.gmra.mrb[6].mxu1 %v825_v15  ;;  %v713_v38 = vpop.permute.xlu1 %712  ;;  %v827_v19 = vmax.f32 %v749_v2, %v792_v36  ;;  %v2982_v15 = vpack.c.bf16 %v2644_v34, %v2642_v33  ;;  %v2646_v36 = vld [vmem:[%s4534_s3 + $0x118] sm:$0xff]  ;;  %v1110_v33 = vld [vmem:[%s4534_s3 + $0x70] sm:$0xff]  ;;  %v1113_v34 = vld [vmem:[%s4534_s3 + $0x88] sm:$0xff] }
 0x224   :  { %v795_v39 = vrot.slane %v753_v12, 1  ;;  %2624 = vmatprep.mubr.msk.f32.mxu1 %vm860_vm9, %v828_v13  ;;  %v715_v40 = vpop.permute.xlu0 %714  ;;  %v2643_v13 = vld [vmem:[%s4534_s3 + $0x100] sm:$0xff] }
 0x225   :  { %v798_v41 = vsel %vm189_vm5, %v793_v30, %v797_v37  ;;  %v724_v42 = vsel %vm716_vm8, %v713_v38, %v715_v40  ;;  %v756_v18 = vmax.f32 %v667_v22, %v715_v40  ;;  %v835_v22 = vld [vmem:[#allocation8] sm:$0xff]  ;;  %v2645_v40 = vld [vmem:[%s4534_s3 + $0x110] sm:$0xff]  ;;  %vm2326_vm8 = vcmask 982016  }
 0x226   :  { %v755_v16 = vmax.f32 %v666_v21, %v724_v42  ;;  %v830_v17 = vmax.f32 %v752_v9, %v798_v41  ;;  %v796_v43 = vsel %vm189_vm5, %v791_v32, %v795_v39  ;;  %v2638_v9 = vld [vmem:[%s4534_s3 + $0xd8] sm:$0xff]  ;;  %v2639_v32 = vld [vmem:[%s4534_s3 + $0xe0] sm:$0xff] }
 0x227   :  { %v801_v44 = vrot.slane %v756_v18, 1  ;;  %974 = vmatmul.mubr.f32.gmra.mrb[8].mxu1 %v827_v19  ;;  %v829_v47 = vmax.f32 %v751_v6, %v796_v43  ;;  %v836_v6 = vld [vmem:[#allocation8 + $0x8] sm:$0xff]  ;;  %v2978_v30 = vpack.c.bf16 %v2640_v11, %v2638_v9  ;;  %v2647_v41 = vld [vmem:[%s4534_s3 + $0x120] sm:$0xff]  ;;  %v2650_v42 = vld [vmem:[%s4534_s3 + $0x138] sm:$0xff] }
 0x228   :  { %v799_v45 = vrot.slane %v755_v16, 1  ;;  %2625 = vmatprep.mubr.msk.f32.mxu1 %vm860_vm9, %v830_v17  ;;  %v2988_v19 = vpack.c.bf16 %v2647_v41, %v2645_v40  ;;  %v2649_v17 = vld [vmem:[%s4534_s3 + $0x130] sm:$0xff]  ;;  %v2651_v43 = vld [vmem:[%s4534_s3 + $0x140] sm:$0xff]  ;;  %v1109_v11 = vld [vmem:[%s4534_s3 + $0x68] sm:$0xff] }
 0x229   :  { %v802_v46 = vsel %vm189_vm5, %v797_v37, %v801_v44  ;;  %v834_v20 = vmax.f32 %v756_v18, %v801_v44  ;;  %v2648_v37 = vld [vmem:[%s4534_s3 + $0x128] sm:$0xff]  ;;  %v2992_v44 = vpack.c.bf16 %v2651_v43, %v2649_v17  ;;  %v2667_v40 = vld [vmem:[%s4534_s3 + $0x160] sm:$0xff]  ;;  %v2669_v41 = vld [vmem:[%s4534_s3 + $0x170] sm:$0xff] }
 0x22a   :  { %v832_v48 = vmax.f32 %v754_v14, %v802_v46  ;;  %v800_v49 = vsel %vm189_vm5, %v795_v39, %v799_v45  ;;  %v833_v21 = vmax.f32 %v755_v16, %v799_v45  ;;  %v2980_v14 = vpack.c.bf16 %v2639_v32, %v2637_v31  ;;  %v2652_v18 = vld [vmem:[%s4534_s3 + $0x148] sm:$0xff]  ;;  %v2654_v45 = vld [vmem:[%s4534_s3 + $0x158] sm:$0xf]  ;;  %v1108_v32 = vld [vmem:[%s4534_s3 + $0x60] sm:$0xff] }
 0x22b   :  { %979 = vmatmul.mubr.f32.gmra.mrb[10].mxu1 %v829_v47  ;;  %v831_v10 = vmax.f32 %v753_v12, %v800_v49  ;;  %v2641_v12 = vld [vmem:[%s4534_s3 + $0xf0] sm:$0xff]  ;;  %v2986_v39 = vpack.c.bf16 %v2648_v37, %v2646_v36  ;;  %v2990_v16 = vpack.c.bf16 %v2652_v18, %v2650_v42  ;;  %v1097_v46 = vld [vmem:[%s4534_s3 + $0x8] sm:$0xff]  ;;  %v1099_v47 = vld [vmem:[%s4534_s3 + $0x18] sm:$0xff]  ;;  %v3016_v17 = vpack.c.bf16 %v2669_v41, %v2667_v40 }
 0x22c   :  { %2626 = vmatprep.mubr.msk.f32.mxu1 %vm860_vm9, %v832_v48  ;;  %v2984_v38 = vpack.c.bf16 %v2643_v13, %v2641_v12  ;;  %v2653_v48 = vld [vmem:[%s4534_s3 + $0x150] sm:$0xf]  ;;  %v2994_v49 = vpack.c.bf16 %v1099_v47, %v1097_v46  ;;  %v1112_v12 = vld [vmem:[%s4534_s3 + $0x80] sm:$0xff]  ;;  %v1117_v37 = vld [vmem:[%s4534_s3 + $0xa8] sm:$0xf] }
 0x22d   :  { %v1114_v13 = vld [vmem:[%s4534_s3 + $0x90] sm:$0xff]  ;;  %v2672_v42 = vld [vmem:[%s4534_s3 + $0x188] sm:$0xff]  ;;  %v2674_v18 = vld [vmem:[%s4534_s3 + $0x198] sm:$0xff] }
 0x22e   :  { %v3012_v36 = vpack.c.bf16 %v1114_v13, %v1112_v12  ;;  %v3018_v43 = vpack.c.bf16 %v2674_v18, %v2672_v42  ;;  %v2676_v46 = vld [vmem:[%s4534_s3 + $0x1a8] sm:$0xff]  ;;  %v2678_v47 = vld [vmem:[%s4534_s3 + $0x1b8] sm:$0xff]  ;;  %v1608_v12 = vld [vmem:[#allocation11 + $0x88] sm:$0xff] }
 0x22f   :  { %984 = vmatmul.mubr.f32.gmra.mrb[12].mxu1 %v831_v10  ;;  %v1096_v10 = vld [vmem:[%s4534_s3] sm:$0xff]  ;;  %v1612_v40 = vld [vmem:[#allocation11 + $0xa8] sm:$0xff]  ;;  %v1613_v42 = vld [vmem:[#allocation11 + $0xb0] sm:$0xff] }
 0x230   :  { %2627 = vmatprep.mubr.msk.f32.mxu1 %vm860_vm9, %v834_v20  ;;  %v1098_v20 = vld [vmem:[%s4534_s3 + $0x10] sm:$0xff]  ;;  %v1614_v18 = vld [vmem:[#allocation11 + $0xb8] sm:$0xff] }
 0x233   :  { %989 = vmatmul.mubr.f32.gmra.mrb[14].mxu1 %v833_v21 }
 0x234   :  { %2798 = vmatprep.mubr.msk.f32.mxu1 %vm994_vm10, %v835_v22  ;;  %v1101_v22 = vld [vmem:[%s4534_s3 + $0x28] sm:$0xff] }
 0x2ea   :  { %v955_v50 = vpop.f32.mrb[0].mxu1 }
 0x2eb   :  { %v957_v51 = vpop.f32.mrb[1].mxu1 }
 0x2ee   :  { %v960_v52 = vpop.f32.mrb[2].mxu1 }
 0x2ef   :  { %v2956_v53 = vpack.c.bf16 %v960_v52, %v955_v50  ;;  %v962_v54 = vpop.f32.mrb[3].mxu1  ;;  %v1103_v50 = vld [vmem:[%s4534_s3 + $0x38] sm:$0xff] }
 0x2f1   :  { %2957 = vmatprep.subr.bf16.mxu1 %v2956_v53 }
 0x2f2   :  { %v965_v55 = vpop.f32.mrb[4].mxu1  ;;  %2959 = vmatpush3.bf16.msra.mxu1 %v2956_v53 }
 0x2f3   :  { %v967_v56 = vpop.f32.mrb[5].mxu1 }
 0x2f4   :  { %v2996_v56 = vpack.c.bf16 %v1098_v20, %v1096_v10  ;;  %v2675_v10 = vld [vmem:[%s4534_s3 + $0x1a0] sm:$0xff]  ;;  %v2677_v20 = vld [vmem:[%s4534_s3 + $0x1b0] sm:$0xff] }
 0x2f6   :  { %v970_v57 = vpop.f32.mrb[6].mxu1 }
 0x2f7   :  { %v2960_v58 = vpack.c.bf16 %v970_v57, %v965_v55  ;;  %v972_v59 = vpop.f32.mrb[7].mxu1  ;;  %v2998_v57 = vpack.c.bf16 %v1103_v50, %v1101_v22  ;;  %v2680_v22 = vld [vmem:[%s4534_s3 + $0x1c8] sm:$0xff]  ;;  %v2682_v50 = vld [vmem:[%s4534_s3 + $0x1d8] sm:$0xff] }
 0x2f8   :  { %v1102_v59 = vld [vmem:[%s4534_s3 + $0x30] sm:$0xff] }
 0x2f9   :  { %2961 = vmatprep.subr.bf16.mxu1 %v2960_v58 }
 0x2fa   :  { %v975_v60 = vpop.f32.mrb[8].mxu1  ;;  %2963 = vmatpush3.bf16.msra.mxu1 %v2960_v58  ;;  %v1100_v58 = vld [vmem:[%s4534_s3 + $0x20] sm:$0xff] }
 0x2fb   :  { %v977_v61 = vpop.f32.mrb[9].mxu1 }
 0x2fe   :  { %v980_v62 = vpop.f32.mrb[10].mxu1 }
 0x2ff   :  { %v2964_v63 = vpack.c.bf16 %v980_v62, %v975_v60  ;;  %v982_v0 = vpop.f32.mrb[11].mxu1 }
 0x300   :  { %v1107_v0 = vld [vmem:[%s4534_s3 + $0x58] sm:$0xff] }
 0x301   :  { %2965 = vmatprep.subr.bf16.mxu1 %v2964_v63 }
 0x302   :  { %v985_v1 = vpop.f32.mrb[12].mxu1  ;;  %2967 = vmatpush3.bf16.msra.mxu1 %v2964_v63  ;;  %v1105_v63 = vld [vmem:[%s4534_s3 + $0x48] sm:$0xff] }
 0x303   :  { %v987_v2 = vpop.f32.mrb[13].mxu1 }
 0x306   :  { %v990_v5 = vpop.f32.mrb[14].mxu1 }
 0x307   :  { %v2968_v23 = vpack.c.bf16 %v990_v5, %v985_v1  ;;  %v992_v25 = vpop.f32.mrb[15].mxu1 }
 0x308   :  { %v3002_v25 = vpack.c.bf16 %v1107_v0, %v1105_v63  ;;  %v2688_v63 = vld [vmem:[%s4534_s3 + $0x208] sm:$0xf]  ;;  %v2687_v0 = vld [vmem:[%s4534_s3 + $0x200] sm:$0xf] }
 0x309   :  { %2970 = vmatprep.subr.msk.bf16.mxu1 %vm2969_vm12, %v2968_v23 }
 0x30a   :  { %2973 = vmatpush3.bf16.msk.msra.mxu1 %vm2969_vm12, %v2968_v23  ;;  %v3000_v23 = vpack.c.bf16 %v1102_v59, %v1100_v58  ;;  %v2683_v58 = vld [vmem:[%s4534_s3 + $0x1e0] sm:$0xff]  ;;  %v2685_v59 = vld [vmem:[%s4534_s3 + $0x1f0] sm:$0xff] }
 0x30b   :  { %2975 = vmatprep.subr.bf16.mxu1 %v2974_v26  ;;  %v1104_v26 = vld [vmem:[%s4534_s3 + $0x40] sm:$0xff] }
 0x30d   :  { %2799 = vmatmul.mubr.msk.f32.vlgmr.msra.gmra.mrb[16].mxu1 %vm994_vm10, %v836_v6  ;;  %v1111_v6 = vld [vmem:[%s4534_s3 + $0x78] sm:$0xff] }
 0x30e   :  { %2801 = vmatprep.mubr.msk.f32.mxu1 %vm994_vm10, %v837_v29  ;;  %2977 = vmatpush1.bf16.msra.mxu1 %v2976_v8  ;;  %v3006_v31 = vpack.c.bf16 %v1111_v6, %v1109_v11  ;;  %v1600_v11 = vld [vmem:[#allocation11 + $0x48] sm:$0xff] }
 0x30f   :  { %2979 = vmatprep.subr.bf16.mxu1 %v2978_v30  ;;  %v3004_v30 = vpack.c.bf16 %v1106_v27, %v1104_v26  ;;  %v1596_v26 = vld [vmem:[#allocation11 + $0x28] sm:$0xff] }
 0x311   :  { %2802 = vmatmul.mubr.msk.f32.gmra.mrb[18].mxu1 %vm994_vm10, %v838_v35  ;;  %v1115_v35 = vld [vmem:[%s4534_s3 + $0x98] sm:$0xff]  ;;  %vm2499_vm10 = vcmask 73728  }
 0x312   :  { %2981 = vmatpush1.bf16.msra.mxu1 %v2980_v14  ;;  %1231 = vmatprep.mubr.f32.mxu1 %v3501_v7  ;;  %v3008_v14 = vpack.c.bf16 %v1110_v33, %v1108_v32  ;;  %v1604_v32 = vld [vmem:[#allocation11 + $0x68] sm:$0xff] }
 0x313   :  { %2983 = vmatprep.subr.bf16.mxu1 %v2982_v15  ;;  %v3010_v15 = vpack.c.bf16 %v1115_v35, %v1113_v34  ;;  %v1605_v34 = vld [vmem:[#allocation11 + $0x70] sm:$0xff]  ;;  %v1606_v35 = vld [vmem:[#allocation11 + $0x78] sm:$0xff] }
 0x316   :  { %2985 = vmatpush1.bf16.msra.mxu1 %v2984_v38  ;;  %v2668_v38 = vld [vmem:[%s4534_s3 + $0x168] sm:$0xff] }
 0x317   :  { %2987 = vmatprep.subr.bf16.mxu1 %v2986_v39  ;;  %v2670_v39 = vld [vmem:[%s4534_s3 + $0x178] sm:$0xff] }
 0x31a   :  { %2989 = vmatpush1.bf16.msra.mxu1 %v2988_v19  ;;  %v1116_v19 = vld [vmem:[%s4534_s3 + $0xa0] sm:$0xf] }
 0x31b   :  { %2991 = vmatprep.subr.bf16.mxu1 %v2990_v16  ;;  %v3014_v16 = vpack.c.bf16 %v2670_v39, %v2668_v38  ;;  %v1611_v39 = vld [vmem:[#allocation11 + $0xa0] sm:$0xff] }
 0x31c   :  { %v3065_v41 = vpack.c.bf16 %v1612_v40, %v1611_v39  ;;  %v1787_v39 = vld [vmem:[#allocation13 + $0x240] sm:$0xff]  ;;  %v1794_v40 = vld [vmem:[#allocation13 + $0x278] sm:$0xff] }
 0x31e   :  { %2993 = vmatpush1.bf16.msra.mxu1 %v2992_v44  ;;  %v2671_v44 = vld [vmem:[%s4534_s3 + $0x180] sm:$0xff] }
 0x31f   :  { %2655 = vmatprep.subr.msk.mxu1 %vm221_vm0, %v2654_v45  ;;  %v2673_v45 = vld [vmem:[%s4534_s3 + $0x190] sm:$0xff] }
 0x322   :  { %2656 = vmatpush1.msk.msra.mxu1 %vm221_vm0, %v2653_v48  ;;  %v3020_v48 = vpack.c.bf16 %v2673_v45, %v2671_v44  ;;  %v1615_v44 = vld [vmem:[#allocation11 + $0xc0] sm:$0xff]  ;;  %v1616_v45 = vld [vmem:[#allocation11 + $0xc8] sm:$0xff] }
 0x323   :  { %2995 = vmatprep.subr.bf16.mxu1 %v2994_v49  ;;  %v3022_v49 = vpack.c.bf16 %v2678_v47, %v2676_v46  ;;  %v3071_v46 = vpack.c.bf16 %v1616_v45, %v1615_v44  ;;  %v1801_v44 = vld [vmem:[#allocation13 + $0x2b0] sm:$0xff]  ;;  %v1808_v45 = vld [vmem:[#allocation13 + $0x2e8] sm:$0xff] }
 0x3e0   :  { %v4044_v21 = vpop.f32.mrb[16].mxu1 }
 0x3e1   :  { %v1146_v51 = vrot.slane %v4044_v21, 1  ;;  %v1383_v52 = vrot.slane %v4044_v21, 2  ;;  %v4054_v53 = vpop.f32.mrb[17].mxu1 }
 0x3e2   :  { %v1145_v54 = vrot.slane %v4054_v53, 1  ;;  %v1382_v55 = vrot.slane %v4054_v53, 2 }
 0x3e4   :  { %v1147_v60 = vsel %vm189_vm5, %v1145_v54, %v1146_v51  ;;  %v4066_v61 = vsel %vm485_vm6, %v1382_v55, %v1383_v52  ;;  %v4068_v62 = vpop.f32.mrb[18].mxu1  ;;  %v2681_v54 = vld [vmem:[%s4534_s3 + $0x1d0] sm:$0xff]  ;;  %v2684_v55 = vld [vmem:[%s4534_s3 + $0x1e8] sm:$0xff] }
 0x3e5   :  { %v1150_v1 = vrot.slane %v4068_v62, 1  ;;  %v1387_v2 = vrot.slane %v4068_v62, 2  ;;  %v4078_v3 = vpop.f32.mrb[19].mxu1  ;;  %2657 = vmatmul.mubr.msk.f32.vlgmr.msra.gmra.mrb[20].mxu1 %vm1152_vm13, %v1147_v60  ;;  %v3032_v60 = vpack.c.bf16 %v2685_v59, %v2683_v58  ;;  %v1723_v58 = vld [vmem:[#allocation13 + $0x40] sm:$0xff]  ;;  %v1718_v59 = vld [vmem:[#allocation13 + $0x18] sm:$0xff] }
 0x3e6   :  { %v1148_v4 = vrot.slane %v4078_v3, 1  ;;  %v1385_v5 = vrot.slane %v4078_v3, 2  ;;  %2997 = vmatpush1.bf16.msra.mxu1 %v2996_v56  ;;  %1237 = vmatprep.mubr.f32.mxu1 %v3501_v7 }
 0x3e7   :  { %2999 = vmatprep.subr.bf16.mxu1 %v2998_v57 }
 0x3e8   :  { %v1149_v28 = vsel %vm189_vm5, %v1146_v51, %v1148_v4  ;;  %v1151_v9 = vsel %vm189_vm5, %v1148_v4, %v1150_v1  ;;  %v4099_v8 = vsel %vm485_vm6, %v1383_v52, %v1385_v5  ;;  %v4104_v29 = vsel %vm485_vm6, %v1385_v5, %v1387_v2  ;;  %v1594_v5 = vld [vmem:[#allocation11 + $0x18] sm:$0xff] }
 0x3e9   :  { %2658 = vmatmul.mubr.msk.f32.gmra.mrb[22].mxu1 %vm1152_vm13, %v1149_v28  ;;  %v3024_v51 = vpack.c.bf16 %v2677_v20, %v2675_v10  ;;  %v3026_v52 = vpack.c.bf16 %v2682_v50, %v2680_v22  ;;  %v1598_v28 = vld [vmem:[#allocation11 + $0x38] sm:$0xff]  ;;  %vm2256_vm6 = vcmask 326656  }
 0x3ea   :  { %3001 = vmatpush1.bf16.msra.mxu1 %v3000_v23  ;;  %1243 = vmatprep.mubr.f32.mxu1 %v3501_v7 }
 0x3eb   :  { %3003 = vmatprep.subr.bf16.mxu1 %v3002_v25  ;;  %v1595_v25 = vld [vmem:[#allocation11 + $0x20] sm:$0xff] }
 0x3ec   :  { %v3041_v27 = vpack.c.bf16 %v1596_v26, %v1595_v25  ;;  %v1731_v25 = vld [vmem:[#allocation13 + $0x80] sm:$0xff]  ;;  %v1738_v26 = vld [vmem:[#allocation13 + $0xb8] sm:$0xff] }
 0x3ed   :  { %2659 = vmatmul.mubr.msk.f32.gmra.mrb[24].mxu1 %vm1152_vm13, %v1151_v9  ;;  %v1599_v9 = vld [vmem:[#allocation11 + $0x40] sm:$0xff] }
 0x3ee   :  { %3005 = vmatpush1.bf16.msra.mxu1 %v3004_v30  ;;  %1249 = vmatprep.mubr.f32.mxu1 %v3501_v7  ;;  %v3047_v6 = vpack.c.bf16 %v1600_v11, %v1599_v9  ;;  %v1745_v9 = vld [vmem:[#allocation13 + $0xf0] sm:$0xff]  ;;  %v1752_v11 = vld [vmem:[#allocation13 + $0x128] sm:$0xff] }
 0x3ef   :  { %3007 = vmatprep.subr.bf16.mxu1 %v3006_v31  ;;  %v1603_v31 = vld [vmem:[#allocation11 + $0x60] sm:$0xff] }
 0x3f0   :  { %v3053_v33 = vpack.c.bf16 %v1604_v32, %v1603_v31  ;;  %v1759_v31 = vld [vmem:[#allocation13 + $0x160] sm:$0xff]  ;;  %v1766_v32 = vld [vmem:[#allocation13 + $0x198] sm:$0xff] }
 0x3f1   :  { %2660 = vmatmul.mubr.msk.f32.gmra.mrb[26].mxu1 %vm1152_vm13, %v1150_v1  ;;  %v1591_v1 = vld [vmem:[#allocation11] sm:$0xff] }
 0x3f2   :  { %3009 = vmatpush1.bf16.msra.mxu1 %v3008_v14  ;;  %1334 = vmatprep.mubr.f32.mxu1 %v3501_v7  ;;  %v3056_v14 = vpack.c.bf16 %v1606_v35, %v1605_v34  ;;  %v1781_v34 = vld [vmem:[#allocation13 + $0x210] sm:$0xff]  ;;  %v3115_v35 = vpack.c.bf16 %v1766_v32, %v1759_v31 }
 0x3f3   :  { %3011 = vmatprep.subr.bf16.mxu1 %v3010_v15  ;;  %v1607_v15 = vld [vmem:[#allocation11 + $0x80] sm:$0xff] }
 0x3f4   :  { %v3059_v13 = vpack.c.bf16 %v1608_v12, %v1607_v15  ;;  %v1773_v15 = vld [vmem:[#allocation13 + $0x1d0] sm:$0xff]  ;;  %v1780_v12 = vld [vmem:[#allocation13 + $0x208] sm:$0xff] }
 0x3f6   :  { %3013 = vmatpush1.bf16.msra.mxu1 %v3012_v36  ;;  %v1609_v36 = vld [vmem:[#allocation11 + $0x90] sm:$0xff] }
 0x3f7   :  { %2661 = vmatprep.subr.msk.mxu1 %vm221_vm0, %v1117_v37  ;;  %v1610_v37 = vld [vmem:[#allocation11 + $0x98] sm:$0xff] }
 0x3f8   :  { %v3062_v38 = vpack.c.bf16 %v1610_v37, %v1609_v36  ;;  %v1795_v36 = vld [vmem:[#allocation13 + $0x280] sm:$0xff]  ;;  %v3119_v37 = vpack.c.bf16 %v1780_v12, %v1773_v15 }
 0x3fa   :  { %2662 = vmatpush1.msk.msra.mxu1 %vm221_vm0, %v1116_v19  ;;  %v3068_v19 = vpack.c.bf16 %v1614_v18, %v1613_v42  ;;  %v1809_v42 = vld [vmem:[#allocation13 + $0x2f0] sm:$0xff]  ;;  %v3123_v18 = vpack.c.bf16 %v1794_v40, %v1787_v39  ;;  %v1750_v39 = vld [vmem:[#allocation13 + $0x118] sm:$0xff] }
 0x3fb   :  { %2663 = vmatmul.mubr.msk.f32.vlgmr.msra.gmra.mrb[20].mxu1 %vm1152_vm13, %v4054_v53  ;;  %3015 = vmatprep.subr.bf16.mxu1 %v3014_v16  ;;  %v2679_v53 = vld [vmem:[%s4534_s3 + $0x1c0] sm:$0xff] }
 0x3fc   :  { %3017 = vmatpush1.bf16.msra.mxu1 %v3016_v17  ;;  %1340 = vmatprep.mubr.f32.mxu1 %v3501_v7  ;;  %v3028_v56 = vpack.c.bf16 %v2681_v54, %v2679_v53 }
 0x3fd   :  { %3019 = vmatprep.subr.bf16.mxu1 %v3018_v43 }
 0x3ff   :  { %2664 = vmatmul.mubr.msk.f32.gmra.mrb[22].mxu1 %vm1152_vm13, %v4044_v21  ;;  %v2686_v21 = vld [vmem:[%s4534_s3 + $0x1f8] sm:$0xff]  ;;  %s3505_s3 = smov 112  }
 0x400   :  { %3021 = vmatpush1.bf16.msra.mxu1 %v3020_v48  ;;  %1346 = vmatprep.mubr.f32.mxu1 %v3501_v7  ;;  %v3030_v57 = vpack.c.bf16 %v2686_v21, %v2684_v55 }
 0x401   :  { %3023 = vmatprep.subr.bf16.mxu1 %v3022_v49 }
 0x403   :  { %2665 = vmatmul.mubr.msk.f32.gmra.mrb[24].mxu1 %vm1152_vm13, %v4078_v3  ;;  %v1593_v3 = vld [vmem:[#allocation11 + $0x10] sm:$0xff] }
 0x404   :  { %3025 = vmatpush1.bf16.msra.mxu1 %v3024_v51  ;;  %1352 = vmatprep.mubr.f32.mxu1 %v3501_v7  ;;  %v3038_v23 = vpack.c.bf16 %v1594_v5, %v1593_v3  ;;  %v1739_v5 = vld [vmem:[#allocation13 + $0xc0] sm:$0xff] }
 0x405   :  { %3027 = vmatprep.subr.bf16.mxu1 %v3026_v52 }
 0x407   :  { %2666 = vmatmul.mubr.msk.f32.gmra.mrb[26].mxu1 %vm1152_vm13, %v4068_v62  ;;  %v1597_v62 = vld [vmem:[#allocation11 + $0x30] sm:$0xff] }
 0x408   :  { %3029 = vmatpush1.bf16.msra.mxu1 %v3028_v56  ;;  %1467 = vmatprep.mubr.f32.mxu1 %v3501_v7 }
 0x409   :  { %3031 = vmatprep.subr.bf16.mxu1 %v3030_v57  ;;  %v1716_v57 = vld [vmem:[#allocation13 + $0x8] sm:$0xff] }
 0x40c   :  { %3033 = vmatpush1.bf16.msra.mxu1 %v3032_v60  ;;  %v3073_v60 = vpack.c.bf16 %v1723_v58, %v1716_v57 }
 0x40d   :  { %2689 = vmatprep.subr.msk.mxu1 %vm221_vm0, %v2688_v63  ;;  %v1725_v63 = vld [vmem:[#allocation13 + $0x50] sm:$0xff] }
 0x410   :  { %2690 = vmatpush1.msk.msra.mxu1 %vm221_vm0, %v2687_v0  ;;  %v3101_v0 = vpack.c.bf16 %v1725_v63, %v1718_v59 }
 0x411   :  { %2691 = vmatmul.mubr.msk.f32.vlgmr.msra.gmra.mrb[20].mxu1 %vm1152_vm13, %v4066_v61  ;;  %v1592_v61 = vld [vmem:[#allocation11 + $0x8] sm:$0xff] }
 0x412   :  { %1473 = vmatprep.mubr.f32.mxu1 %v3501_v7  ;;  %v3035_v4 = vpack.c.bf16 %v1592_v61, %v1591_v1  ;;  %v1717_v1 = vld [vmem:[#allocation13 + $0x10] sm:$0xff]  ;;  %v1724_v61 = vld [vmem:[#allocation13 + $0x48] sm:$0xff]  ;;  %3102 = vmatprep.subr.bf16.mxu1 %v3101_v0 }
 0x413   :  { %v3103_v3 = vpack.c.bf16 %v1724_v61, %v1717_v1 }
 0x414   :  { %3036 = vmatpush1.bf16.msra.mxu0 %v3035_v4  ;;  %v1732_v4 = vld [vmem:[#allocation13 + $0x88] sm:$0xff] }
 0x415   :  { %2692 = vmatmul.mubr.msk.f32.gmra.mrb[22].mxu1 %vm1152_vm13, %v4099_v8  ;;  %3037 = vmatprep.subr.bf16.mxu0 %v3503_v24  ;;  %v1601_v8 = vld [vmem:[#allocation11 + $0x50] sm:$0xff] }
 0x416   :  { %1479 = vmatprep.mubr.f32.mxu1 %v3501_v7  ;;  %3104 = vmatpush1.bf16.msra.mxu1 %v3103_v3 }
 0x418   :  { %3039 = vmatpush1.bf16.msra.mxu0 %v3038_v23  ;;  %v3105_v23 = vpack.c.bf16 %v1739_v5, %v1732_v4 }
 0x419   :  { %2693 = vmatmul.mubr.msk.f32.gmra.mrb[24].mxu1 %vm1152_vm13, %v4104_v29  ;;  %3040 = vmatprep.subr.bf16.mxu0 %v3503_v24  ;;  %v1602_v29 = vld [vmem:[#allocation11 + $0x58] sm:$0xff] }
 0x41a   :  { %1485 = vmatprep.mubr.f32.mxu1 %v3501_v7  ;;  %v3050_v30 = vpack.c.bf16 %v1602_v29, %v1601_v8  ;;  %3106 = vmatprep.subr.bf16.mxu1 %v3105_v23  ;;  %v3111_v8 = vpack.c.bf16 %v1752_v11, %v1745_v9  ;;  %v1767_v29 = vld [vmem:[#allocation13 + $0x1a0] sm:$0xff] }
 0x41c   :  { %3042 = vmatpush1.bf16.msra.mxu0 %v3041_v27  ;;  %v3107_v27 = vpack.c.bf16 %v1738_v26, %v1731_v25 }
 0x41d   :  { %2694 = vmatmul.mubr.msk.f32.gmra.mrb[26].mxu1 %vm1152_vm13, %v1387_v2  ;;  %v3044_v2 = vpack.c.bf16 %v1598_v28, %v1597_v62  ;;  %3043 = vmatprep.subr.bf16.mxu0 %v3503_v24  ;;  %v1746_v62 = vld [vmem:[#allocation13 + $0xf8] sm:$0xff]  ;;  %v1753_v28 = vld [vmem:[#allocation13 + $0x130] sm:$0xff] }
 0x41e   :  { %1974 = vmatprep.mubr.f32.mxu1 %v3501_v7  ;;  %3108 = vmatpush1.bf16.msra.mxu1 %v3107_v27 }
 0x420   :  { %3045 = vmatpush1.bf16.msra.mxu0 %v3044_v2  ;;  %v3109_v2 = vpack.c.bf16 %v1753_v28, %v1746_v62  ;;  %v1730_v28 = vld [vmem:[#allocation13 + $0x78] sm:$0xff] }
 0x421   :  { %3046 = vmatprep.subr.bf16.mxu0 %v3503_v24 }
 0x422   :  { %3110 = vmatprep.subr.bf16.mxu1 %v3109_v2 }
 0x423   :  { %3112 = vmatpush1.bf16.msra.mxu1 %v3111_v8 }
 0x424   :  { %3048 = vmatpush1.bf16.msra.mxu0 %v3047_v6  ;;  %v1760_v6 = vld [vmem:[#allocation13 + $0x168] sm:$0xff] }
 0x425   :  { %3049 = vmatprep.subr.bf16.mxu0 %v3503_v24 }
 0x428   :  { %3051 = vmatpush1.bf16.msra.mxu0 %v3050_v30  ;;  %v3113_v30 = vpack.c.bf16 %v1767_v29, %v1760_v6  ;;  %v1729_v29 = vld [vmem:[#allocation13 + $0x70] sm:$0xff] }
 0x429   :  { %3052 = vmatprep.subr.bf16.mxu0 %v3503_v24 }
 0x42a   :  { %3114 = vmatprep.subr.bf16.mxu1 %v3113_v30  ;;  %v1736_v30 = vld [vmem:[#allocation13 + $0xa8] sm:$0xff] }
 0x42b   :  { %3116 = vmatpush1.bf16.msra.mxu1 %v3115_v35  ;;  %v3079_v12 = vpack.c.bf16 %v1736_v30, %v1729_v29  ;;  %v1742_v29 = vld [vmem:[#allocation13 + $0xd8] sm:$0xff] }
 0x42c   :  { %3054 = vmatpush1.bf16.msra.mxu0 %v3053_v33  ;;  %v1774_v33 = vld [vmem:[#allocation13 + $0x1d8] sm:$0xff] }
 0x42d   :  { %3055 = vmatprep.subr.bf16.mxu0 %v3503_v24 }
 0x430   :  { %3057 = vmatpush1.bf16.msra.mxu0 %v3056_v14  ;;  %v3117_v14 = vpack.c.bf16 %v1781_v34, %v1774_v33 }
 0x431   :  { %3058 = vmatprep.subr.bf16.mxu0 %v3503_v24 }
 0x432   :  { %3118 = vmatprep.subr.bf16.mxu1 %v3117_v14 }
 0x433   :  { %3120 = vmatpush1.bf16.msra.mxu1 %v3119_v37 }
 0x434   :  { %3060 = vmatpush1.bf16.msra.mxu0 %v3059_v13  ;;  %v1788_v13 = vld [vmem:[#allocation13 + $0x248] sm:$0xff] }
 0x435   :  { %3061 = vmatprep.subr.bf16.mxu0 %v3503_v24 }
 0x438   :  { %3063 = vmatpush1.bf16.msra.mxu0 %v3062_v38  ;;  %v3121_v38 = vpack.c.bf16 %v1795_v36, %v1788_v13 }
 0x439   :  { %3064 = vmatprep.subr.bf16.mxu0 %v3503_v24 }
 0x43a   :  { %3122 = vmatprep.subr.bf16.mxu1 %v3121_v38  ;;  %v1743_v38 = vld [vmem:[#allocation13 + $0xe0] sm:$0xff] }
 0x43b   :  { %3124 = vmatpush1.bf16.msra.mxu1 %v3123_v18 }
 0x43c   :  { %3066 = vmatpush1.bf16.msra.mxu0 %v3065_v41  ;;  %v1802_v41 = vld [vmem:[#allocation13 + $0x2b8] sm:$0xff] }
 0x43d   :  { %3067 = vmatprep.subr.bf16.mxu0 %v3503_v24 }
 0x440   :  { %3069 = vmatpush1.bf16.msra.mxu0 %v3068_v19  ;;  %v3125_v19 = vpack.c.bf16 %v1809_v42, %v1802_v41  ;;  %v3083_v42 = vpack.c.bf16 %v1750_v39, %v1743_v38  ;;  %v1762_v39 = vld [vmem:[#allocation13 + $0x178] sm:$0xff] }
 0x441   :  { %3070 = vmatprep.subr.bf16.mxu0 %v3503_v24 }
 0x442   :  { %3126 = vmatprep.subr.bf16.mxu1 %v3125_v19 }
 0x444   :  { %3072 = vmatpush1.bf16.msra.mxu0 %v3071_v46  ;;  %v3127_v46 = vpack.c.bf16 %v1808_v45, %v1801_v44  ;;  %v1757_v44 = vld [vmem:[#allocation13 + $0x150] sm:$0xff]  ;;  %v1764_v45 = vld [vmem:[#allocation13 + $0x188] sm:$0xff] }
 0x445   :  { %3074 = vmatprep.subr.bf16.mxu0 %v3073_v60 }
 0x446   :  { %3128 = vmatpush1.bf16.msra.mxu1 %v3127_v46 }
 0x4e4   :  { %v4242_v16 = vpop.f32.mrb[20].mxu1 }
 0x4e5   :  { %v4244_v17 = vpop.f32.mrb[21].mxu1  ;;  %v1500_v48 = vmax.f32 %v4242_v16, 0.0  ;;  %v1737_v16 = vld [vmem:[#allocation13 + $0xb0] sm:$0xff] }
 0x4e6   :  { %v1501_v43 = vmax.f32 %v4244_v17, 0.0  ;;  %v1715_v17 = vld [vmem:[#allocation13] sm:$0xff]  ;;  %v3077_v8 = vpack.c.bf16 %v1737_v16, %v1730_v28  ;;  %v1720_v16 = vld [vmem:[#allocation13 + $0x28] sm:$0xff] }
 0x4e8   :  { %1518 = vrot.lane.b32.xlu0 %v1501_v43, %s3505_s3  ;;  %v4250_v47 = vpop.f32.mrb[22].mxu1 }
 0x4e9   :  { %v1502_v49 = vmax.f32 %v4250_v47, 0.0  ;;  %v4254_v10 = vpop.f32.mrb[23].mxu1 }
 0x4ea   :  { %v1503_v52 = vmax.f32 %v4254_v10, 0.0 }
 0x4eb   :  { %v3298_v20 = vpack.i.bf16 %v1502_v49, %v1500_v48 }
 0x4ec   :  { %v4260_v22 = vpop.f32.mrb[24].mxu1 }
 0x4ed   :  { %v1504_v50 = vmax.f32 %v4260_v22, 0.0  ;;  %3299 = vrot.lane.b32.xlu1 %v3298_v20, %s3505_s3  ;;  %v4263_v51 = vpop.f32.mrb[25].mxu1 }
 0x4ee   :  { %v1505_v21 = vmax.f32 %v4263_v51, 0.0  ;;  %v1744_v51 = vld [vmem:[#allocation13 + $0xe8] sm:$0xff] }
 0x4ef   :  { %1524 = vrot.lane.b32.xlu0 %v1504_v50, %s3505_s3 }
 0x4f0   :  { %v4268_v53 = vpop.f32.mrb[26].mxu1 }
 0x4f1   :  { %v1506_v54 = vmax.f32 %v4268_v53, 0.0  ;;  %1522 = vrot.lane.b32.xlu1 %v1503_v52, %s3505_s3  ;;  %v4273_v55 = vpop.f32.mrb[27].mxu1 }
 0x4f2   :  { %v1507_v56 = vmax.f32 %v4273_v55, 0.0  ;;  %v1758_v55 = vld [vmem:[#allocation13 + $0x158] sm:$0xff] }
 0x4f3   :  { %1528 = vrot.lane.b32.xlu0 %v1506_v54, %s3505_s3 }
 0x4f5   :  { %1526 = vrot.lane.b32.xlu1 %v1505_v21, %s3505_s3 }
 0x4f9   :  { %1530 = vrot.lane.b32.xlu1 %v1507_v56, %s3505_s3 }
 0x55a   :  { %v1519_v20 = vpop.permute.xlu0 %1518 }
 0x55b   :  { %v1546_v59 = vmax.f32 %v1501_v43, %v1519_v20  ;;  %v1722_v43 = vld [vmem:[#allocation13 + $0x38] sm:$0xff] }
 0x55c   :  { %v3075_v9 = vpack.c.bf16 %v1722_v43, %v1715_v17  ;;  %v1807_v17 = vld [vmem:[#allocation13 + $0x2e0] sm:$0xff] }
 0x55d   :  { %v1564_v23 = vrot.slane %v1546_v59, 1 }
 0x55f   :  { %v3300_v57 = vpop.permute.xlu1 %3299 }
 0x560   :  { %v3301_v58 = vunpack.i.l.bf16 %v3300_v57  ;;  %v3302_v60 = vunpack.i.h.bf16 %v3300_v57  ;;  %v1779_v57 = vld [vmem:[#allocation13 + $0x200] sm:$0xff] }
 0x561   :  { %v1525_v4 = vpop.permute.xlu0 %1524 }
 0x562   :  { %v1533_v63 = vsel %vm1532_vm14, %v3301_v58, %v1519_v20  ;;  %v1772_v20 = vld [vmem:[#allocation13 + $0x1c8] sm:$0xff]  ;;  %v3087_v58 = vpack.c.bf16 %v1764_v45, %v1757_v44 }
 0x563   :  { %v1545_v0 = vmax.f32 %v1500_v48, %v1533_v63  ;;  %v1523_v1 = vpop.permute.xlu1 %1522  ;;  %v1771_v63 = vld [vmem:[#allocation13 + $0x1c0] sm:$0xff]  ;;  %v1776_v45 = vld [vmem:[#allocation13 + $0x1e8] sm:$0xff] }
 0x564   :  { %v1534_v61 = vsel %vm1532_vm14, %v3302_v60, %v1523_v1  ;;  %v1548_v3 = vmax.f32 %v1503_v52, %v1523_v1  ;;  %v3089_v60 = vpack.c.bf16 %v1779_v57, %v1772_v20  ;;  %v1786_v1 = vld [vmem:[#allocation13 + $0x238] sm:$0xff]  ;;  %v1777_v57 = vld [vmem:[#allocation13 + $0x1f0] sm:$0xff] }
 0x565   :  { %v1547_v5 = vmax.f32 %v1502_v49, %v1534_v61  ;;  %v1561_v26 = vrot.slane %v1545_v0, 1  ;;  %v1529_v31 = vpop.permute.xlu0 %1528  ;;  %v1793_v61 = vld [vmem:[#allocation13 + $0x270] sm:$0xff] }
 0x566   :  { %v1565_v25 = vrot.slane %v1548_v3, 1 }
 0x567   :  { %v1562_v27 = vrot.slane %v1547_v5, 1  ;;  %v1527_v62 = vpop.permute.xlu1 %1526 }
 0x568   :  { %v1566_v48 = vsel %vm189_vm5, %v1564_v23, %v1565_v25  ;;  %v1535_v2 = vsel %vm1532_vm14, %v1525_v4, %v1527_v62  ;;  %v1550_v10 = vmax.f32 %v1505_v21, %v1527_v62  ;;  %v1751_v21 = vld [vmem:[#allocation13 + $0x120] sm:$0xff]  ;;  %v3093_v4 = vpack.c.bf16 %v1793_v61, %v1786_v1  ;;  %v1792_v23 = vld [vmem:[#allocation13 + $0x268] sm:$0xff]  ;;  %v1806_v62 = vld [vmem:[#allocation13 + $0x2d8] sm:$0xff] }
 0x569   :  { %v1563_v47 = vsel %vm189_vm5, %v1561_v26, %v1562_v27  ;;  %v1549_v49 = vmax.f32 %v1504_v50, %v1535_v2  ;;  %v1584_v52 = vmax.f32 %v1546_v59, %v1566_v48  ;;  %v3081_v37 = vpack.c.bf16 %v1751_v21, %v1744_v51  ;;  %v1727_v48 = vld [vmem:[#allocation13 + $0x60] sm:$0xff]  ;;  %v1721_v2 = vld [vmem:[#allocation13 + $0x30] sm:$0xff]  ;;  %v1790_v1 = vld [vmem:[#allocation13 + $0x258] sm:$0xff] }
 0x56a   :  { %v1583_v11 = vmax.f32 %v1545_v0, %v1563_v47  ;;  %v1569_v6 = vrot.slane %v1550_v10, 1  ;;  %v1778_v0 = vld [vmem:[#allocation13 + $0x1f8] sm:$0xff]  ;;  %v1728_v47 = vld [vmem:[#allocation13 + $0x68] sm:$0xff] }
 0x56b   :  { %v1567_v32 = vrot.slane %v1549_v49, 1  ;;  %2695 = vmatprep.mubr.msk.f32.mxu0 %vm1617_vm15, %v1584_v52  ;;  %v1531_v33 = vpop.permute.xlu1 %1530  ;;  %v1719_v52 = vld [vmem:[#allocation13 + $0x20] sm:$0xff] }
 0x56c   :  { %v1570_v34 = vsel %vm189_vm5, %v1565_v25, %v1569_v6  ;;  %v1536_v35 = vsel %vm1532_vm14, %v1529_v31, %v1531_v33  ;;  %v1552_v22 = vmax.f32 %v1507_v56, %v1531_v33  ;;  %1695 = vmatmul.mubr.f32.vlgmr.msra.gmra.mrb[16].mxu0 %v1583_v11  ;;  %v1765_v56 = vld [vmem:[#allocation13 + $0x190] sm:$0xff]  ;;  %v1800_v25 = vld [vmem:[#allocation13 + $0x2a8] sm:$0xff]  ;;  %v1734_v11 = vld [vmem:[#allocation13 + $0x98] sm:$0xff] }
 0x56d   :  { %v1551_v50 = vmax.f32 %v1506_v54, %v1536_v35  ;;  %v1586_v14 = vmax.f32 %v1548_v3, %v1570_v34  ;;  %v1568_v15 = vsel %vm189_vm5, %v1562_v27, %v1567_v32  ;;  %3076 = vmatpush1.bf16.msra.mxu0 %v3075_v9  ;;  %v3085_v19 = vpack.c.bf16 %v1765_v56, %v1758_v55  ;;  %v1799_v27 = vld [vmem:[#allocation13 + $0x2a0] sm:$0xff]  ;;  %v1726_v9 = vld [vmem:[#allocation13 + $0x58] sm:$0xff]  ;;  %v1733_v31 = vld [vmem:[#allocation13 + $0x90] sm:$0xff] }
 0x56e   :  { %v1573_v13 = vrot.slane %v1552_v22, 1  ;;  %v1585_v36 = vmax.f32 %v1547_v5, %v1568_v15  ;;  %3078 = vmatprep.subr.bf16.mxu0 %v3077_v8  ;;  %v3091_v3 = vpack.c.bf16 %v1778_v0, %v1771_v63  ;;  %v1785_v5 = vld [vmem:[#allocation13 + $0x230] sm:$0xff]  ;;  %v3097_v26 = vpack.c.bf16 %v1807_v17, %v1800_v25  ;;  %v1735_v8 = vld [vmem:[#allocation13 + $0xa0] sm:$0xff]  ;;  %v1748_v34 = vld [vmem:[#allocation13 + $0x108] sm:$0xff] }
 0x56f   :  { %v1571_v40 = vrot.slane %v1551_v50, 1  ;;  %2696 = vmatprep.mubr.msk.f32.mxu0 %vm1617_vm15, %v1586_v14  ;;  %v3095_v43 = vpack.c.bf16 %v1792_v23, %v1785_v5  ;;  %v3099_v28 = vpack.c.bf16 %v1806_v62, %v1799_v27  ;;  %v3131_v30 = vpack.c.bf16 %v1726_v9, %v1719_v52  ;;  %v1756_v14 = vld [vmem:[#allocation13 + $0x148] sm:$0xff]  ;;  %v1769_v55 = vld [vmem:[#allocation13 + $0x1b0] sm:$0xff]  ;;  %v1763_v56 = vld [vmem:[#allocation13 + $0x180] sm:$0xff] }
 0x570   :  { %v1574_v41 = vsel %vm189_vm5, %v1569_v6, %v1573_v13  ;;  %1700 = vmatmul.mubr.f32.gmra.mrb[18].mxu0 %v1585_v36  ;;  %v1590_v46 = vmax.f32 %v1552_v22, %v1573_v13  ;;  %v1741_v6 = vld [vmem:[#allocation13 + $0xd0] sm:$0xff]  ;;  %v3161_v21 = vpack.c.bf16 %v1742_v29, %v1735_v8  ;;  %v1755_v22 = vld [vmem:[#allocation13 + $0x140] sm:$0xff]  ;;  %v1754_v13 = vld [vmem:[#allocation13 + $0x138] sm:$0xff] }
 0x571   :  { %v1588_v53 = vmax.f32 %v1550_v10, %v1574_v41  ;;  %v1572_v54 = vsel %vm189_vm5, %v1567_v32, %v1571_v40  ;;  %3080 = vmatpush1.bf16.msra.mxu0 %v3079_v12  ;;  %v1589_v59 = vmax.f32 %v1551_v50, %v1571_v40  ;;  %v3129_v10 = vpack.c.bf16 %v1727_v48, %v1720_v16  ;;  %v1740_v32 = vld [vmem:[#allocation13 + $0xc8] sm:$0xff]  ;;  %v1749_v50 = vld [vmem:[#allocation13 + $0x110] sm:$0xff]  ;;  %v1747_v12 = vld [vmem:[#allocation13 + $0x100] sm:$0xff] }
 0x572   :  { %v1587_v18 = vmax.f32 %v1549_v49, %v1572_v54  ;;  %3082 = vmatprep.subr.bf16.mxu0 %v3081_v37  ;;  %v3157_v49 = vpack.c.bf16 %v1728_v47, %v1721_v2  ;;  %v3133_v51 = vpack.c.bf16 %v1741_v6, %v1734_v11  ;;  %v3135_v15 = vpack.c.bf16 %v1740_v32, %v1733_v31  ;;  %v1770_v41 = vld [vmem:[#allocation13 + $0x1b8] sm:$0xff]  ;;  %v1761_v54 = vld [vmem:[#allocation13 + $0x170] sm:$0xff]  ;;  %v1775_v63 = vld [vmem:[#allocation13 + $0x1e0] sm:$0xff] }
 0x573   :  { %2697 = vmatprep.mubr.msk.f32.mxu0 %vm1617_vm15, %v1588_v53  ;;  %v3137_v37 = vpack.c.bf16 %v1755_v22, %v1748_v34  ;;  %v3165_v38 = vpack.c.bf16 %v1756_v14, %v1749_v50  ;;  %v3139_v53 = vpack.c.bf16 %v1754_v13, %v1747_v12  ;;  %v3169_v44 = vpack.c.bf16 %v1770_v41, %v1763_v56  ;;  %v1782_v0 = vld [vmem:[#allocation13 + $0x218] sm:$0xff]  ;;  %v1791_v5 = vld [vmem:[#allocation13 + $0x260] sm:$0xff]  ;;  %v1789_v27 = vld [vmem:[#allocation13 + $0x250] sm:$0xff] }
 0x574   :  { %1705 = vmatmul.mubr.f32.gmra.mrb[20].mxu0 %v1587_v18  ;;  %3158 = vmatprep.subr.bf16.mxu1 %v3157_v49  ;;  %v1798_v23 = vld [vmem:[#allocation13 + $0x298] sm:$0xff]  ;;  %v3147_v17 = vpack.c.bf16 %v1782_v0, %v1775_v63  ;;  %v1796_v62 = vld [vmem:[#allocation13 + $0x288] sm:$0xff]  ;;  %v1811_v16 = vld [vmem:[#allocation13 + $0x300] sm:$0xff]  ;;  %vm2236_vm5 = vcmask 261120  }
 0x575   :  { %2698 = vmatprep.mubr.msk.f32.mxu0 %vm1617_vm15, %v1590_v46  ;;  %3084 = vmatpush1.bf16.msra.mxu0 %v3083_v42  ;;  %v1768_v42 = vld [vmem:[#allocation13 + $0x1a8] sm:$0xff]  ;;  %v1783_v46 = vld [vmem:[#allocation13 + $0x220] sm:$0xff]  ;;  %v1805_v48 = vld [vmem:[#allocation13 + $0x2d0] sm:$0xff] }
 0x576   :  { %3086 = vmatprep.subr.bf16.mxu0 %v3085_v19  ;;  %v3141_v19 = vpack.c.bf16 %v1769_v55, %v1762_v39  ;;  %v1812_v2 = vld [vmem:[#allocation13 + $0x308] sm:$0xff]  ;;  %v1803_v52 = vld [vmem:[#allocation13 + $0x2c0] sm:$0xff]  ;;  %v1810_v9 = vld [vmem:[#allocation13 + $0x2f8] sm:$0xff] }
 0x577   :  { %v3155_v11 = vpack.c.bf16 %v1810_v9, %v1803_v52  ;;  %v2304_v56 = vld [vmem:[%s4540_s9] sm:$0xff]  ;;  %v2305_v41 = vld [vmem:[%s4540_s9 + $0x8] sm:$0xff]  ;;  %v2310_v0 = vld [vmem:[%s4540_s9 + $0x30] sm:$0xff] }
 0x578   :  { %1710 = vmatmul.mubr.f32.gmra.mrb[22].mxu0 %v1589_v59  ;;  %v3143_v59 = vpack.c.bf16 %v1768_v42, %v1761_v54  ;;  %v3186_v42 = vpack.c.bf16 %v2305_v41, %v2304_v56  ;;  %v2316_v9 = vld [vmem:[%s4540_s9 + $0x60] sm:$0xff] }
 0x579   :  { %3088 = vmatpush1.bf16.msra.mxu0 %v3087_v58  ;;  %1889 = vmatprep.mubr.f32.mxu0 %v3501_v7  ;;  %v1784_v58 = vld [vmem:[#allocation13 + $0x228] sm:$0xff] }
 0x57a   :  { %3090 = vmatprep.subr.bf16.mxu0 %v3089_v60  ;;  %v3145_v60 = vpack.c.bf16 %v1783_v46, %v1776_v45 }
 0x57d   :  { %3092 = vmatpush1.bf16.msra.mxu0 %v3091_v3  ;;  %v3173_v3 = vpack.c.bf16 %v1784_v58, %v1777_v57  ;;  %v2309_v57 = vld [vmem:[%s4540_s9 + $0x28] sm:$0xff] }
 0x57e   :  { %3094 = vmatprep.subr.bf16.mxu0 %v3093_v4  ;;  %v1797_v4 = vld [vmem:[#allocation13 + $0x290] sm:$0xff] }
 0x581   :  { %3096 = vmatpush1.bf16.msra.mxu0 %v3095_v43  ;;  %v3149_v43 = vpack.c.bf16 %v1797_v4, %v1790_v1  ;;  %v2311_v1 = vld [vmem:[%s4540_s9 + $0x38] sm:$0xff] }
 0x582   :  { %3098 = vmatprep.subr.bf16.mxu0 %v3097_v26  ;;  %v3177_v26 = vpack.c.bf16 %v1798_v23, %v1791_v5  ;;  %v3195_v4 = vpack.c.bf16 %v2311_v1, %v2310_v0 }
 0x585   :  { %3100 = vmatpush1.bf16.msra.mxu0 %v3099_v28  ;;  %v1804_v28 = vld [vmem:[#allocation13 + $0x2c8] sm:$0xff] }
 0x586   :  { %3130 = vmatprep.subr.bf16.mxu0 %v3129_v10  ;;  %v3151_v10 = vpack.c.bf16 %v1796_v62, %v1789_v27  ;;  %v3153_v47 = vpack.c.bf16 %v1811_v16, %v1804_v28 }
 0x63f   :  { %v4314_v33 = vpop.f32.mrb[16].mxu0 }
 0x640   :  { %v1698_v35 = vpop.f32.mrb[17].mxu0  ;;  %2699 = vmatmul.mubr.msk.f32.vlgmr.msra.gmra.mrb[24].mxu0 %vm1532_vm14, %v4314_v33  ;;  %2703 = vmatmul.mubr.msk.f32.vlgmr.msra.gmra.mrb[28].mxu1 %vm1532_vm14, %v4314_v33 }
 0x641   :  { %3132 = vmatpush1.bf16.msra.mxu0 %v3131_v30  ;;  %3160 = vmatpush3.bf16.msra.mxu1 %v3157_v49  ;;  %v3181_v49 = vpack.c.bf16 %v1812_v2, %v1805_v48  ;;  %v2314_v48 = vld [vmem:[%s4540_s9 + $0x50] sm:$0xff]  ;;  %v2315_v2 = vld [vmem:[%s4540_s9 + $0x58] sm:$0xff] }
 0x642   :  { %1895 = vmatprep.mubr.f32.mxu0 %v3501_v7  ;;  %1980 = vmatprep.mubr.f32.mxu1 %v3501_v7 }
 0x643   :  { %v4322_v36 = vpop.f32.mrb[18].mxu0  ;;  %3134 = vmatprep.subr.bf16.mxu0 %v3133_v51  ;;  %3162 = vmatprep.subr.bf16.mxu1 %v3161_v21 }
 0x644   :  { %v1703_v40 = vpop.f32.mrb[19].mxu0  ;;  %2700 = vmatmul.mubr.msk.f32.gmra.mrb[26].mxu0 %vm1532_vm14, %v4322_v36  ;;  %2704 = vmatmul.mubr.msk.f32.gmra.mrb[30].mxu1 %vm1532_vm14, %v4322_v36 }
 0x645   :  { %3136 = vmatpush1.bf16.msra.mxu0 %v3135_v15  ;;  %3164 = vmatpush3.bf16.msra.mxu1 %v3161_v21 }
 0x646   :  { %1899 = vmatprep.mubr.f32.mxu0 %v3501_v7  ;;  %1985 = vmatprep.mubr.f32.mxu1 %v3501_v7 }
 0x647   :  { %v4330_v18 = vpop.f32.mrb[20].mxu0  ;;  %3138 = vmatprep.subr.bf16.mxu0 %v3137_v37  ;;  %3166 = vmatprep.subr.bf16.mxu1 %v3165_v38 }
 0x648   :  { %v1708_v20 = vpop.f32.mrb[21].mxu0  ;;  %2701 = vmatmul.mubr.msk.f32.gmra.mrb[28].mxu0 %vm1532_vm14, %v4330_v18  ;;  %2705 = vmatmul.mubr.msk.f32.gmra.mrb[32].mxu1 %vm1532_vm14, %v4330_v18 }
 0x649   :  { %3140 = vmatpush1.bf16.msra.mxu0 %v3139_v53  ;;  %3168 = vmatpush3.bf16.msra.mxu1 %v3165_v38  ;;  %v2308_v20 = vld [vmem:[%s4540_s9 + $0x20] sm:$0xff] }
 0x64a   :  { %1905 = vmatprep.mubr.f32.mxu0 %v3501_v7  ;;  %1991 = vmatprep.mubr.f32.mxu1 %v3501_v7  ;;  %v3192_v58 = vpack.c.bf16 %v2309_v57, %v2308_v20 }
 0x64b   :  { %v1711_v61 = vpop.f32.mrb[22].mxu0  ;;  %3142 = vmatprep.subr.bf16.mxu0 %v3141_v19  ;;  %3170 = vmatprep.subr.bf16.mxu1 %v3169_v44  ;;  %v2307_v19 = vld [vmem:[%s4540_s9 + $0x18] sm:$0xff] }
 0x64c   :  { %v1713_v25 = vpop.f32.mrb[23].mxu0  ;;  %2702 = vmatmul.mubr.msk.f32.gmra.mrb[30].mxu0 %vm1532_vm14, %v1711_v61  ;;  %2706 = vmatmul.mubr.msk.f32.gmra.mrb[34].mxu1 %vm1532_vm14, %v1711_v61 }
 0x64d   :  { %3144 = vmatpush1.bf16.msra.mxu0 %v3143_v59  ;;  %3172 = vmatpush3.bf16.msra.mxu1 %v3169_v44  ;;  %v2312_v25 = vld [vmem:[%s4540_s9 + $0x40] sm:$0xff] }
 0x64e   :  { %2832 = vmatprep.mubr.msk.f32.mxu1 %vm1532_vm14, %v4314_v33  ;;  %3146 = vmatprep.subr.bf16.mxu0 %v3145_v60 }
 0x64f   :  { %3174 = vmatprep.subr.bf16.mxu1 %v3173_v3  ;;  %2061 = vmatprep.mubr.f32.mxu0 %v3501_v7 }
 0x651   :  { %3148 = vmatpush1.bf16.msra.mxu0 %v3147_v17  ;;  %3176 = vmatpush3.bf16.msra.mxu1 %v3173_v3  ;;  %v2313_v17 = vld [vmem:[%s4540_s9 + $0x48] sm:$0xff] }
 0x652   :  { %3150 = vmatprep.subr.bf16.mxu0 %v3149_v43  ;;  %3178 = vmatprep.subr.bf16.mxu1 %v3177_v26  ;;  %v3198_v62 = vpack.c.bf16 %v2313_v17, %v2312_v25 }
 0x655   :  { %3152 = vmatpush1.bf16.msra.mxu0 %v3151_v10  ;;  %3180 = vmatpush3.bf16.msra.mxu1 %v3177_v26 }
 0x656   :  { %3154 = vmatprep.subr.bf16.mxu0 %v3153_v47  ;;  %3182 = vmatprep.subr.bf16.mxu1 %v3181_v49  ;;  %v3201_v47 = vpack.c.bf16 %v2315_v2, %v2314_v48 }
 0x659   :  { %3156 = vmatpush1.bf16.msra.mxu0 %v3155_v11  ;;  %3184 = vmatpush3.bf16.msra.mxu1 %v3181_v49  ;;  %v2317_v11 = vld [vmem:[%s4540_s9 + $0x68] sm:$0xff] }
 0x65a   :  { %3185 = vmatprep.subr.bf16.mxu0 %v3503_v24  ;;  %3206 = vmatprep.subr.bf16.mxu1 %v3503_v24 }
 0x65c   :  { %2707 = vmatmul.mubr.msk.f32.vlgmr.msra.gmra.mrb[32].mxu0 %vm1532_vm14, %v4314_v33  ;;  %2833 = vmatmul.mubr.msk.f32.vlgmr.msra.gmra.mrb[36].mxu1 %vm1532_vm14, %v4322_v36 }
 0x65d   :  { %2835 = vmatprep.mubr.msk.f32.mxu1 %vm1532_vm14, %v4330_v18  ;;  %2065 = vmatprep.mubr.f32.mxu0 %v3501_v7 }
 0x65e   :  { %3187 = vmatpush3.bf16.msra.mxu0 %v3186_v42 }
 0x65f   :  { %3188 = vmatprep.subr.bf16.mxu0 %v3503_v24 }
 0x660   :  { %2708 = vmatmul.mubr.msk.f32.gmra.mrb[34].mxu0 %vm1532_vm14, %v4322_v36  ;;  %2836 = vmatmul.mubr.msk.f32.gmra.mrb[38].mxu1 %vm1532_vm14, %v1711_v61 }
 0x661   :  { %2071 = vmatprep.mubr.f32.mxu0 %v3501_v7  ;;  %2893 = vmatprep.mubr.msk.f32.mxu1 %vm3510_vm1, %v3501_v7 }
 0x664   :  { %2709 = vmatmul.mubr.msk.f32.gmra.mrb[36].mxu0 %vm1532_vm14, %v4330_v18  ;;  %v2306_v18 = vld [vmem:[%s4540_s9 + $0x10] sm:$0xff] }
 0x665   :  { %2075 = vmatprep.mubr.f32.mxu0 %v3501_v7  ;;  %v3189_v46 = vpack.c.bf16 %v2307_v19, %v2306_v18 }
 0x667   :  { %3190 = vmatpush3.bf16.msra.mxu0 %v3189_v46 }
 0x668   :  { %2710 = vmatmul.mubr.msk.f32.gmra.mrb[38].mxu0 %vm1532_vm14, %v1711_v61  ;;  %3191 = vmatprep.subr.bf16.mxu0 %v3503_v24 }
 0x669   :  { %2868 = vmatprep.mubr.msk.f32.mxu0 %vm3510_vm1, %v3501_v7 }
 0x66b   :  { %3193 = vmatpush3.bf16.msra.mxu0 %v3192_v58 }
 0x66c   :  { %3194 = vmatprep.subr.bf16.mxu0 %v3503_v24 }
 0x66f   :  { %3196 = vmatpush3.bf16.msra.mxu0 %v3195_v4 }
 0x670   :  { %3197 = vmatprep.subr.bf16.mxu0 %v3503_v24 }
 0x673   :  { %3199 = vmatpush3.bf16.msra.mxu0 %v3198_v62 }
 0x674   :  { %3200 = vmatprep.subr.bf16.mxu0 %v3503_v24 }
 0x677   :  { %3202 = vmatpush3.bf16.msra.mxu0 %v3201_v47 }
 0x678   :  { %3203 = vmatprep.subr.bf16.mxu0 %v3503_v24 }
 0x713   :  { %v4360_v6 = vpop.f32.mrb[24].mxu0  ;;  %v1976_v8 = vpop.f32.mrb[28].mxu1 }
 0x714   :  { %v1893_v29 = vpop.f32.mrb[25].mxu0  ;;  %v1978_v30 = vpop.f32.mrb[29].mxu1  ;;  %v2190_v31 = vrot.slane %v1976_v8, 4  ;;  %v2167_v32 = vrot.slane %v4360_v6, 2  ;;  %v2210_v21 = vrot.slane %v1976_v8, 6 }
 0x715   :  { %v2168_v22 = vrot.slane %v1893_v29, 2  ;;  %v2211_v15 = vrot.slane %v1978_v30, 6  ;;  %v2189_v36 = vrot.slane %v1893_v29, 4  ;;  %v3204_v30 = vpack.c.bf16 %v2317_v11, %v2316_v9 }
 0x716   :  { %2193 = vrot.lane.b32.xlu1 %v2190_v31, %s3496_s21  ;;  %2169 = vrot.lane.b32.xlu0 %v2167_v32, %s3491_s24  ;;  %v2318_v32 = vld [vmem:[%s4540_s9 + $0x70] sm:$0xff] }
 0x717   :  { %v1897_v33 = vpop.f32.mrb[26].mxu0  ;;  %v1982_v51 = vpop.f32.mrb[30].mxu1  ;;  %3205 = vmatpush3.bf16.msra.mxu0 %v3204_v30 }
 0x718   :  { %v1898_v34 = vpop.f32.mrb[27].mxu0  ;;  %v1983_v35 = vpop.f32.mrb[31].mxu1  ;;  %2866 = vmatprep.subr.mxu0 %v3501_v7  ;;  %v2401_v51 = vld [vmem:[%s4542_s11] sm:$0xff] }
 0x719   :  { %v2403_v34 = vld [vmem:[%s4542_s11 + $0x10] sm:$0xff] }
 0x71a   :  { %2212 = vrot.lane.b32.xlu0 %v2210_v21, %s3506_s29  ;;  %2171 = vrot.lane.b32.xlu1 %v2168_v22, %s3491_s24  ;;  %v2402_v21 = vld [vmem:[%s4542_s11 + $0x8] sm:$0xff] }
 0x71b   :  { %v4367_v50 = vpop.f32.mrb[28].mxu0  ;;  %v1987_v14 = vpop.f32.mrb[32].mxu1  ;;  %2867 = vmatpush3.msra.mxu0 %v2318_v32  ;;  %v3207_v22 = vpack.c.bf16 %v2402_v21, %v2401_v51 }
 0x71c   :  { %v1903_v12 = vpop.f32.mrb[29].mxu0  ;;  %v1989_v13 = vpop.f32.mrb[33].mxu1  ;;  %v2201_v55 = vrot.slane %v1987_v14, 4  ;;  %v2179_v53 = vrot.slane %v4367_v50, 2  ;;  %v2221_v44 = vrot.slane %v1987_v14, 6  ;;  %v2404_v14 = vld [vmem:[%s4542_s11 + $0x18] sm:$0xff] }
 0x71d   :  { %v2180_v54 = vrot.slane %v1903_v12, 2  ;;  %v2222_v45 = vrot.slane %v1989_v13, 6  ;;  %v2200_v59 = vrot.slane %v1903_v12, 4  ;;  %3208 = vmatpush3.bf16.msra.mxu1 %v3207_v22  ;;  %v3210_v12 = vpack.c.bf16 %v2404_v14, %v2403_v34  ;;  %v2405_v13 = vld [vmem:[%s4542_s11 + $0x20] sm:$0xff]  ;;  %v2410_v14 = vld [vmem:[%s4542_s11 + $0x48] sm:$0xff] }
 0x71e   :  { %2191 = vrot.lane.b32.xlu0 %v2189_v36, %s3496_s21  ;;  %2214 = vrot.lane.b32.xlu1 %v2211_v15, %s3506_s29  ;;  %v2406_v36 = vld [vmem:[%s4542_s11 + $0x28] sm:$0xff]  ;;  %v2409_v22 = vld [vmem:[%s4542_s11 + $0x40] sm:$0xff] }
 0x71f   :  { %v1907_v37 = vpop.f32.mrb[30].mxu0  ;;  %v1993_v38 = vpop.f32.mrb[34].mxu1  ;;  %3209 = vmatprep.subr.bf16.mxu1 %v3503_v24 }
 0x720   :  { %v1908_v39 = vpop.f32.mrb[31].mxu0  ;;  %v1994_v40 = vpop.f32.mrb[35].mxu1  ;;  %v3213_v37 = vpack.c.bf16 %v2406_v36, %v2405_v13  ;;  %v2407_v38 = vld [vmem:[%s4542_s11 + $0x30] sm:$0xff]  ;;  %v2716_v13 = vld [vmem:[%s4541_s10] ss:$0 sm:$0xff]  ;;  %s2512_s10 = sld [smem:[#allocation3]] }
 0x721   :  { %3211 = vmatpush3.bf16.msra.mxu1 %v3210_v12  ;;  %v2408_v39 = vld [vmem:[%s4542_s11 + $0x38] sm:$0xff]  ;;  %v2411_v12 = vld [vmem:[%s4542_s11 + $0x50] sm:$0xf]  ;;  %s3511_s11 = smov [#allocation14]  }
 0x722   :  { %2232 = vrot.lane.b32.xlu0 %v1983_v35, %s3507_s5  ;;  %2204 = vrot.lane.b32.xlu1 %v2201_v55, %s3496_s21 }
 0x723   :  { %3212 = vmatprep.subr.bf16.mxu1 %v3503_v24 }
 0x725   :  { %3214 = vmatpush3.bf16.msra.mxu1 %v3213_v37 }
 0x726   :  { %2181 = vrot.lane.b32.xlu0 %v2179_v53, %s3491_s24  ;;  %2183 = vrot.lane.b32.xlu1 %v2180_v54, %s3491_s24 }
 0x727   :  { %3215 = vmatprep.subr.bf16.mxu1 %v3503_v24 }
 0x72a   :  { %2223 = vrot.lane.b32.xlu0 %v2221_v44, %s3506_s29  ;;  %2225 = vrot.lane.b32.xlu1 %v2222_v45, %s3506_s29 }
 0x72e   :  { %2202 = vrot.lane.b32.xlu0 %v2200_v59, %s3496_s21 }
 0x72f   :  { %v4399_v60 = vpop.f32.mrb[36].mxu1  ;;  %v2063_v63 = vpop.f32.mrb[32].mxu0 }
 0x730   :  { %v2064_v61 = vpop.f32.mrb[33].mxu0  ;;  %v2148_v3 = vpop.f32.mrb[37].mxu1  ;;  %v2272_v15 = vrot.slane %v4399_v60, 4 }
 0x732   :  { %2242 = vrot.lane.b32.xlu0 %v1994_v40, %s3507_s5  ;;  %v3216_v40 = vpack.c.bf16 %v2408_v39, %v2407_v38 }
 0x733   :  { %v2837_v5 = vpop.f32.mrb[38].mxu1  ;;  %v2067_v23 = vpop.f32.mrb[34].mxu0 }
 0x734   :  { %v2250_v43 = vrot.slane %v2067_v23, 2  ;;  %v2157_v26 = vpop.f32.mrb[39].mxu1  ;;  %2234 = vrot.lane.b32.xlu1 %v2067_v23, %s3507_s5  ;;  %v2069_v27 = vpop.f32.mrb[35].mxu0  ;;  %v2283_v28 = vrot.slane %v2837_v5, 4  ;;  %3217 = vmatpush3.bf16.msra.mxu1 %v3216_v40  ;;  %v2497_v40 = vlaneseq }
 0x735   :  { %v2251_v49 = vrot.slane %v2069_v27, 2  ;;  %v2271_v35 = vrot.slane %v2069_v27, 4  ;;  %3218 = vmatprep.subr.bf16.mxu1 %v3503_v24 }
 0x736   :  { %2252 = vrot.lane.b32.xlu0 %v2250_v43, %s3508_s26 }
 0x737   :  { %v2073_v16 = vpop.f32.mrb[36].mxu0 }
 0x738   :  { %2286 = vrot.lane.b32.xlu1 %v2283_v28, %s3509_s30  ;;  %v2074_v10 = vpop.f32.mrb[37].mxu0 }
 0x73b   :  { %v2077_v52 = vpop.f32.mrb[38].mxu0 }
 0x73c   :  { %v2261_v8 = vrot.slane %v2077_v52, 2  ;;  %2254 = vrot.lane.b32.xlu1 %v2251_v49, %s3508_s26  ;;  %v2079_v29 = vpop.f32.mrb[39].mxu0 }
 0x73d   :  { %v2282_v31 = vrot.slane %v2079_v29, 4  ;;  %v2262_v33 = vrot.slane %v2079_v29, 2 }
 0x73e   :  { %2263 = vrot.lane.b32.xlu0 %v2261_v8, %s3508_s26 }
 0x740   :  { %2244 = vrot.lane.b32.xlu1 %v2077_v52, %s3507_s5 }
 0x742   :  { %2284 = vrot.lane.b32.xlu0 %v2282_v31, %s3509_s30 }
 0x744   :  { %2265 = vrot.lane.b32.xlu1 %v2262_v33, %s3508_s26  ;;  %v2715_v33 = vld [vmem:[%s4539_s8] ss:$0 sm:$0xff] }
 0x746   :  { %2273 = vrot.lane.b32.xlu0 %v2271_v35, %s3509_s30 }
 0x748   :  { %2275 = vrot.lane.b32.xlu1 %v2272_v15, %s3509_s30  ;;  %v3219_v15 = vpack.c.bf16 %v2410_v14, %v2409_v22 }
 0x74a   :  { %3220 = vmatpush3.bf16.msra.mxu1 %v3219_v15 }
 0x74b   :  { %2891 = vmatprep.subr.mxu1 %v3501_v7 }
 0x74e   :  { %2892 = vmatpush3.msk.msra.mxu1 %vm221_vm0, %v2411_v12  ;;  %vm2523_vm0 = vcmask 74753  }
 0x788   :  { %v2170_v55 = vpop.permute.xlu0 %2169  ;;  %v2194_v56 = vpop.permute.xlu1 %2193 }
 0x78c   :  { %v2213_v41 = vpop.permute.xlu0 %2212  ;;  %v2172_v53 = vpop.permute.xlu1 %2171 }
 0x78d   :  { %v2174_v0 = vsel %vm2173_vm2, %v2170_v55, %v2172_v53  ;;  %v2498_v55 = vand.u32 127, %v2497_v40 }
 0x78e   :  { %v2176_v5 = vadd.f32 %v2174_v0, %v4360_v6 }
 0x790   :  { %v2192_v54 = vpop.permute.xlu0 %2191  ;;  %v2215_v42 = vpop.permute.xlu1 %2214 }
 0x791   :  { %v2196_v4 = vsel %vm2195_vm3, %v2192_v54, %v2194_v56  ;;  %v2217_v16 = vsel %vm2216_vm4, %v2213_v41, %v2215_v42  ;;  %v2537_v56 = vstv %s2722_s19  ;;  %v2718_v41 = vld [vmem:[%s4543_s12] ss:$0 sm:$0xff]  ;;  %s2559_s12 = sshll.u32 %s3511_s11, 4  ;;  %s2560_s12 = int_to_ptr.vmem [resolvable:$true] %s2559_s12 }
 0x792   :  { %v2198_v17 = vadd.f32 %v2196_v4, %v2176_v5  ;;  %vm2538_vm9 = vcmp.eq.s32.totalorder %v2498_v55, %v2537_v56  ;;  %s3433_s2 = scalar_lea.vmem %s2560_s12, 32  ;;  %p3438_p4 = scmp.lt.s32.totalorder %s2560_s12, %s2560_s12 }
 0x793   :  { %v2723_v54 = vsel %vm2538_vm9, 1.0, %v3501_v7  ;;  %p3434_p3 = scmp.ne.s32.totalorder %s2560_s12, %s3433_s2  ;;  %p3439_p5 = scmp.lt.s32.totalorder %s3433_s2, %s3433_s2 }
 0x794   :  { %v2233_v18 = vpop.permute.xlu0 %2232  ;;  %v2205_v19 = vpop.permute.xlu1 %2204  ;;  %v2219_v2 = vadd.f32 %v2217_v16, %v2198_v17 }
 0x795   :  { %p3440_p6 = por %p3439_p5, %p3438_p4 }
 0x797   :  { %p3441_p7 = pnand %p3440_p6, %p3434_p3 }
 0x798   :  { %v2182_v44 = vpop.permute.xlu0 %2181  ;;  %v2184_v45 = vpop.permute.xlu1 %2183 }
 0x799   :  { %v2185_v63 = vsel %vm2173_vm2, %v2182_v44, %v2184_v45 }
 0x79a   :  { %v2187_v61 = vadd.f32 %v2185_v63, %v4367_v50 }
 0x79c   :  { %v2224_v46 = vpop.permute.xlu0 %2223  ;;  %v2226_v57 = vpop.permute.xlu1 %2225 }
 0x79d   :  { %v2227_v26 = vsel %vm2216_vm4, %v2224_v46, %v2226_v57 }
 0x7a0   :  { %v2203_v20 = vpop.permute.xlu0 %2202 }
 0x7a1   :  { %v2206_v1 = vsel %vm2195_vm3, %v2203_v20, %v2205_v19 }
 0x7a2   :  { %v2208_v23 = vadd.f32 %v2206_v1, %v2187_v61 }
 0x7a4   :  { %v2243_v58 = vpop.permute.xlu0 %2242  ;;  %v2229_v62 = vadd.f32 %v2227_v26, %v2208_v23 }
 0x7a6   :  { %v2235_v59 = vpop.permute.xlu1 %2234 }
 0x7a7   :  { %v2237_v48 = vsel %vm2236_vm5, %v2233_v18, %v2235_v59 }
 0x7a8   :  { %v2253_v24 = vpop.permute.xlu0 %2252  ;;  %v2239_v6 = vadd.f32 %v2237_v48, %v2219_v2 }
 0x7aa   :  { %v2287_v60 = vpop.permute.xlu1 %2286 }
 0x7ae   :  { %v2255_v3 = vpop.permute.xlu1 %2254 }
 0x7af   :  { %v2257_v47 = vsel %vm2256_vm6, %v2253_v24, %v2255_v3  ;;  %v2513_v24 = vstv %s2512_s10 }
 0x7b0   :  { %v2264_v25 = vpop.permute.xlu0 %2263  ;;  %v2259_v11 = vadd.f32 %v2257_v47, %v2239_v6  ;;  %vm2514_vm12 = vcmp.eq.s32.totalorder %v2498_v55, %v2513_v24 }
 0x7b1   :  { %v2721_v3 = vsel %vm2514_vm12, 1.0, %v3501_v7 }
 0x7b2   :  { %v2245_v43 = vpop.permute.xlu1 %2244 }
 0x7b3   :  { %v2246_v27 = vsel %vm2236_vm5, %v2243_v58, %v2245_v43 }
 0x7b4   :  { %v2285_v28 = vpop.permute.xlu0 %2284  ;;  %v2248_v10 = vadd.f32 %v2246_v27, %v2229_v62 }
 0x7b5   :  { %v2288_v9 = vsel %vm2277_vm7, %v2285_v28, %v2287_v60 }
 0x7b6   :  { %v2266_v50 = vpop.permute.xlu1 %2265 }
 0x7b7   :  { %v2267_v49 = vsel %vm2256_vm6, %v2264_v25, %v2266_v50 }
 0x7b8   :  { %v2269_v52 = vadd.f32 %v2267_v49, %v2248_v10  ;;  %v2274_v29 = vpop.permute.xlu0 %2273 }
 0x7ba   :  { %v2290_v8 = vadd.f32 %v2288_v9, %v2269_v52  ;;  %v2276_v30 = vpop.permute.xlu1 %2275 }
 0x7bb   :  { %v2278_v31 = vsel %vm2277_vm7, %v2274_v29, %v2276_v30 }
 0x7bc   :  { %v2292_v32 = vrot.slane %v2290_v8, 7  ;;  %v2280_v51 = vadd.f32 %v2278_v31, %v2259_v11 }
 0x7be   :  { %v2294_v21 = vsel %vm1007_vm11, %v2280_v51, %v2292_v32  ;;  %vm2495_vm11 = vcmask 74752  }
 0x7bf   :  { %v2302_v34 = vadd.f32 %v2715_v33, %v2294_v21 }
 0x7c1   :  { %v2303_v35 = vmax.f32 %v2302_v34, 0.0 }
 0x7c3   :  { %2869 = vmatmul.mubr.msk.f32.vlgmr.msra.gmra.mrb[40].mxu0 %vm2326_vm8, %v2303_v35 }
 0x896   :  { %v2396_v36 = vpop.f32.mrb[40].mxu0 }
 0x897   :  { %v2397_v37 = vadd.f32 %v2716_v13, %v2396_v36  ;;  %v2870_v38 = vpop.f32.mrb[41].mxu0 }
 0x899   :  { %v2400_v39 = vmax.f32 %v2397_v37, 0.0 }
 0x89b   :  { %2894 = vmatmul.mubr.msk.f32.vlgmr.msra.gmra.mrb[40].mxu1 %vm1152_vm13, %v2400_v39 }
 0x96e   :  { %v2491_v53 = vpop.f32.mrb[40].mxu1 }
 0x96f   :  { %v2492_v42 = vadd.f32 %v2718_v41, %v2491_v53  ;;  %v2895_v18 = vpop.f32.mrb[41].mxu1 }
 0x971   :  { %v2524_v19 = vsel %vm2523_vm0, %v2492_v42, -inf  ;;  %v2500_v44 = vsel %vm2499_vm10, %v2492_v42, -inf  ;;  %v2541_v45 = vmul.f32 %v2723_v54, %v2492_v42  ;;  %2496 = vst.msk [vmem:[#allocation14] sm:$0x3] %vm2495_vm11, %v2492_v42  ;;  %v2517_v5 = vmul.f32 %v2721_v3, %v2492_v42 }
 0x972   :  { %2525 = vmax.xlane.f32.xlu0 %v2524_v19  ;;  %2501 = vmax.xlane.f32.xlu1 %v2500_v44 }
 0x973   :  { %v2542_v46 = vsel %vm2523_vm0, %v2541_v45, 0.0  ;;  %v2518_v23 = vsel %vm2499_vm10, %v2517_v5, 0.0 }
 0x976   :  { %2543 = vadd.xlane.f32.xlu1 %v2542_v46 }
 0x9ff   :  { %v2526_v20 = vpop.xlane.xlu0 %2525  ;;  %v2502_v57 = vpop.xlane.xlu1 %2501 }
 0xa00   :  { %v2527_v58 = vsub.f32 %v2492_v42, %v2526_v20  ;;  %v2503_v59 = vsub.f32 %v2492_v42, %v2502_v57 }
 0xa02   :  { %v2528_v60 = vmul.f32 1.442695, %v2527_v58  ;;  %v2504_v63 = vmul.f32 1.442695, %v2503_v59 }
 0xa04   :  { %3303 = vpow2.f32 %v2528_v60 }
 0xa05   :  { %3305 = vpow2.f32 %v2504_v63 }
 0xa0e   :  { %v3304_v0 = vpop.eup %3303 }
 0xa0f   :  { %v2530_v1 = vsel %vm2523_vm0, %v3304_v0, 0.0  ;;  %v3306_v61 = vpop.eup %3305 }
 0xa10   :  { %2531 = vadd.xlane.f32.xlu0 %v2530_v1  ;;  %v2506_v4 = vsel %vm2499_vm10, %v3306_v61, 0.0 }
 0xa14   :  { %2507 = vadd.xlane.f32.xlu0 %v2506_v4 }
 0xa18   :  { %2519 = vadd.xlane.f32.xlu0 %v2518_v23 }
 0xa19   :  { %3444 = shalt.err (!%p3441_p7)
}
 0xa1a   :  { %s3445_s28 = scalar_lea.hbm %s4544_s13, 32 }
 0xa1b   :  { %p3446_p8 = scmp.ne.s32.totalorder %s4544_s13, %s3445_s28  ;;  %p3449_p9 = scmp.lt.u32.totalorder %s3445_s28, %s4544_s13 }
 0xa1d   :  { %p3451_p10 = pnand %p3449_p9, %p3446_p8 }
 0xa1f   :  { %3454 = shalt.err (!%p3451_p10)
}
 0xa20   :  { %2562 = dma.vmem_to_hbm [thread:$0]  %s2560_s12, 32, %s4544_s13, [#allocation5]   ;;  %v2544_v62 = vpop.xlane.xlu1 %2543  ;;  %vm2551_vm13 = vcmask 0  }
 0xa21   :  { %s3512_s1 = smov [#allocation15]  }
 0xa22   :  { %s2569_s25 = sshll.u32 %s3512_s1, 4  ;;  %s2570_s25 = int_to_ptr.vmem [resolvable:$true] %s2569_s25 }
 0xa23   :  { %s3455_s13 = scalar_lea.vmem %s2570_s25, 16  ;;  %s3459_s26 = scalar_lea.vmem %s2570_s25, 32 }
 0xa24   :  { %p3456_p11 = scmp.ne.s32.totalorder %s2570_s25, %s3455_s13  ;;  %p3460_p12 = scmp.lt.s32.totalorder %s2570_s25, %s2570_s25 }
 0xa25   :  { %p3461_p13 = scmp.lt.s32.totalorder %s3459_s26, %s3455_s13 }
 0xa27   :  { %p3462_p0 = por %p3461_p13, %p3460_p12 }
 0xa29   :  { %p3463_p1 = pnand %p3462_p0, %p3456_p11 }
 0xa9d   :  { %v2532_v7 = vpop.xlane.xlu0 %2531 }
 0xa9e   :  { %3307 = vlog2.f32 %v2532_v7 }
 0xaa1   :  { %v2508_v25 = vpop.xlane.xlu0 %2507 }
 0xaa2   :  { %3309 = vlog2.f32 %v2508_v25 }
 0xaa5   :  { %v2520_v2 = vpop.xlane.xlu0 %2519 }
 0xaa8   :  { %v3308_v17 = vpop.eup %3307 }
 0xaa9   :  { %v2534_v43 = vmul.f32 0.6931472, %v3308_v17 }
 0xaab   :  { %v2535_v26 = vadd.f32 %v2534_v43, %v2526_v20 }
 0xaac   :  { %v3310_v27 = vpop.eup %3309 }
 0xaad   :  { %v2510_v28 = vmul.f32 0.6931472, %v3310_v27  ;;  %v2545_v16 = vsub.f32 %v2535_v26, %v2544_v62 }
 0xaaf   :  { %v2511_v48 = vadd.f32 %v2510_v28, %v2502_v57  ;;  %v2547_v50 = vrot.slane %v2545_v16, 1 }
 0xab1   :  { %v2521_v10 = vsub.f32 %v2511_v48, %v2520_v2 }
 0xab3   :  { %v2549_v47 = vadd.f32 %v2547_v50, %v2521_v10 }
 0xab5   :  { %v2550_v49 = vmul.f32 0.5, %v2549_v47 }
 0xab7   :  { %2552 = vst.msk [vmem:[#allocation15] sm:$0x1] %vm2551_vm13, %v2550_v49 }
 0xab8   :  { %3466 = shalt.err (!%p3463_p1)
}
 0xab9   :  { %s4550_s29 = sld [smem:[#allocation23_spill]] }
 0xabf   :  { %s3467_s23 = scalar_lea.hbm %s4550_s29, 16 }
 0xac0   :  { %p3468_p2 = scmp.ne.s32.totalorder %s4550_s29, %s3467_s23  ;;  %p3471_p3 = scmp.lt.u32.totalorder %s3467_s23, %s4550_s29 }
 0xac2   :  { %p3473_p4 = pnand %p3471_p3, %p3468_p2 }
 0xac4   :  { %3476 = shalt.err (!%p3473_p4)
}
 0xac5   :  { %2572 = dma.vmem_to_hbm [thread:$0]  %s2570_s25, 16, %s4550_s29, [#allocation16]  }
 0xac6   :  { %3485 = dma.done.wait [#allocation5], 32  }
 0xac7   :  { %3486 = vsyncadd [#allocation5], 4294967264 }
 0xac8   :  { %3487 = dma.done.wait [#allocation16], 16  }
 0xac9   :  { %3488 = vsyncadd [#allocation16], 4294967280 }
 0xaca   :  { %2579 = vsyncpa [#allocation4], 1 }
 0xacb   :  { %2580 = vsyncpa [#allocation9], 1 }
 0xacc   :  { %2581 = vsyncpa [#allocation12], 1 }
 0xacd   :  { %2582 = vsyncpa [#allocation5], 1 }
 0xace   :  { %2583 = vsyncpa [#allocation16], 1 }
 0xacf   :  { %2584 = vsyncpa [#allocation6], 1 }

</bundles_post_ra>
